<compile_context>
chip_gen: v5e
topology: v5e:2x2
jax: 0.10.0
libtpu: 0.0.40
codegen_flags: <defaults>
</compile_context>

<pallas_src>
import jax
import jax.numpy as jnp
import numpy as np
from jax import lax
from jax.experimental import pallas as pl
from jax.experimental.pallas import tpu as pltpu


def _round_up(x, m):
    return ((x + m - 1) // m) * m


def bigru_kernel(x_ref, h0_ref, w_ih_ref, w_hh_ref, gib_ref, bhn_ref,
                 cat_ref, hT_ref, h_scratch, gi_scratch):
    """Fused bidirectional GRU.  grid = (direction, time_block)."""
    d = pl.program_id(0)            # 0 = forward, 1 = backward
    tb = pl.program_id(1)           # sequential ("arbitrary") time-block axis
    n_tb = pl.num_programs(1)

    Bp, Hp = h0_ref.shape           # padded batch / hidden (static)
    TtB = x_ref.shape[0]
    Tt = TtB // Bp                  # timesteps per grid step (static)
    align = 128 if Bp % 128 == 0 else 8

    @pl.when(tb == 0)
    def _init():
        h_scratch[...] = h0_ref[...].astype(jnp.float32)

    # ---- hoisted input projection: ONE MXU matmul for the whole time block ----
    # gi = x @ W_ih^T + (b_ih + [b_hr, b_hz, 0]) for all Tt timesteps at once.
    gi_scratch[...] = (
        jnp.dot(x_ref[...], w_ih_ref[...], preferred_element_type=jnp.float32)
        + gib_ref[...]).astype(gi_scratch.dtype)

    w_hh_t = w_hh_ref[...]                                   # (Hp, 3Hp), pre-transposed
    # Hoist the b_hn broadcast out of the unrolled recurrence.
    b_hn = jnp.broadcast_to(bhn_ref[...], (Bp, Hp))          # (Bp, Hp)

    def step(i, h):
        # Forward direction walks local steps 0..Tt-1, backward walks Tt-1..0.
        lt = d * (Tt - 1) + (1 - 2 * d) * i
        off = pl.multiple_of(lt * Bp, align)                 # sublane/lane aligned
        g = gi_scratch[pl.ds(off, Bp), :].astype(jnp.float32)           # (Bp, 3Hp)
        gh = jnp.dot(h.astype(w_hh_t.dtype), w_hh_t,
                     preferred_element_type=jnp.float32)                # (Bp, 3Hp)
        # Hp is a multiple of 128 -> every gate slice is lane-tile aligned.
        r = jax.nn.sigmoid(g[:, 0:Hp] + gh[:, 0:Hp])
        z = jax.nn.sigmoid(g[:, Hp:2 * Hp] + gh[:, Hp:2 * Hp])
        n = jnp.tanh(g[:, 2 * Hp:] + r * (gh[:, 2 * Hp:] + b_hn))
        h_new = (1.0 - z) * n + z * h
        # Unmasked full-tile store (Bp % 8 == 0, Hp % 128 == 0).
        cat_ref[pl.ds(off, Bp), :] = h_new.astype(cat_ref.dtype)
        return h_new

    # Cap the unroll so live g/gh/r/z/n/h per step do not blow the vreg budget.
    h_last = lax.fori_loop(0, Tt, step, h_scratch[...], unroll=min(Tt, 8))
    h_scratch[...] = h_last

    @pl.when(tb == n_tb - 1)
    def _finalize():
        hT_ref[...] = h_last.astype(hT_ref.dtype)


def _vmem_bytes_estimate(Tt, Bp, Hp, compute_dtype, gi_dtype):
    cd = jnp.dtype(compute_dtype).itemsize
    gd = jnp.dtype(gi_dtype).itemsize
    x_bytes = 2 * Tt * Bp * Hp * cd            # double-buffered x block
    out_bytes = 2 * Tt * Bp * Hp * 4           # double-buffered output block
    gi_bytes = Tt * Bp * 3 * Hp * gd           # hoisted input projection
    w_bytes = 2 * 2 * Hp * 3 * Hp * cd         # both weight operands, 2 buffers
    misc = 4 * Bp * Hp * 4 + (1 << 20)         # h0/hT/h_scratch + slack
    return x_bytes + out_bytes + gi_bytes + w_bytes + misc


def _auto_time_block(T, Bp, Hp, compute_dtype, gi_dtype, budget):
    for Tt in range(T, 0, -1):
        if T % Tt == 0 and _vmem_bytes_estimate(Tt, Bp, Hp, compute_dtype,
                                                gi_dtype) <= budget:
            return Tt
    return 1


def bigru_pallas(emb, h0, w_ih, w_hh, b_ih, b_hh, *, time_block=None,
                 compute_dtype=jnp.float32, gi_dtype=jnp.float32,
                 core_parallel=False, vmem_budget_bytes=40 << 20):
    """Bidirectional GRU over the full sequence in one pallas_call.

    emb:  (T, B, H) embedded inputs
    h0:   (2, B, H) initial hidden (dir 0 = fwd, 1 = bwd)
    w_ih, w_hh: (2, 3H, H)   b_ih, b_hh: (2, 3H)   (PyTorch gate order r, z, n)
    returns: concatenated output (T, B, 2H) float32, final hidden (2, B, H) float32

    Production knobs (per review): compute_dtype=bf16 on v6e/v7x, gi_dtype=bf16
    on v7x, core_parallel=True on v7x, and pad B up to 128/256 rows upstream so
    the recurrent matmul fills an MXU tile.
    """
    T, B, H = emb.shape
    Hp = _round_up(H, 128)            # lane-aligned hidden dim -> aligned gate slices
    Bp = _round_up(B, 8)              # sublane-aligned batch -> unmasked stores
    # TODO(synk): at production sizes pad B to 128 (v5e MXU tile) / 256 (v6e,v7x
    # bf16 MXU tile) instead of 8 so the serial (Bp,Hp)x(Hp,3Hp) matmul fills the MXU.

    # ---- zero-pad per gate block so padded lanes stay exactly zero ----
    def pad_gate_w(w):                                     # (2, 3H, H) -> (2, 3Hp, Hp)
        w3 = w.reshape(2, 3, H, H)
        w3 = jnp.pad(w3, ((0, 0), (0, 0), (0, Hp - H), (0, Hp - H)))
        return w3.reshape(2, 3 * Hp, Hp)

    def pad_gate_b(b):                                     # (2, 3H) -> (2, 3Hp)
        b3 = jnp.pad(b.reshape(2, 3, H), ((0, 0), (0, 0), (0, Hp - H)))
        return b3.reshape(2, 3 * Hp)

    w_ih_p, w_hh_p = pad_gate_w(w_ih), pad_gate_w(w_hh)
    b_ih_p, b_hh_p = pad_gate_b(b_ih), pad_gate_b(b_hh)

    # Pre-transpose weights once -> no per-timestep transpose in the kernel.
    w_ih_t = jnp.swapaxes(w_ih_p, 1, 2).astype(compute_dtype)   # (2, Hp, 3Hp)
    w_hh_t = jnp.swapaxes(w_hh_p, 1, 2).astype(compute_dtype)   # (2, Hp, 3Hp)

    # Pre-fold biases: gi bias = b_ih + [b_hr, b_hz, 0]; b_hn stays separate.
    gib = (b_ih_p + jnp.concatenate(
        [b_hh_p[:, :2 * Hp], jnp.zeros((2, Hp), b_hh_p.dtype)], axis=1)
           ).reshape(2, 1, 3 * Hp).astype(jnp.float32)
    bhn = b_hh_p[:, 2 * Hp:].reshape(2, 1, Hp).astype(jnp.float32)

    # Pad activations / initial hidden; flatten time/batch for dense packing.
    emb_p = jnp.pad(emb, ((0, 0), (0, Bp - B), (0, Hp - H)))
    x2 = emb_p.reshape(T * Bp, Hp).astype(compute_dtype)
    h0_p = jnp.pad(h0, ((0, 0), (0, Bp - B), (0, Hp - H))).astype(jnp.float32)

    # ---- time-block sizing against the VMEM budget (v7x: 64 MiB physical) ----
    if time_block is None:
        Tt = _auto_time_block(T, Bp, Hp, compute_dtype, gi_dtype, vmem_budget_bytes)
    else:
        Tt = time_block
    assert T % Tt == 0, "sequence length must be divisible by time_block"
    n_tb = T // Tt
    vmem_limit = int(min(max(2 * _vmem_bytes_estimate(Tt, Bp, Hp, compute_dtype,
                                                      gi_dtype), 32 << 20),
                         48 << 20))

    tmap = lambda d, tb: d * (n_tb - 1) + (1 - 2 * d) * tb   # reversed blocks for d=1
    x_map = lambda d, tb: (tmap(d, tb), 0)
    dir_map = lambda d, tb: (d, 0, 0)
    cat_map = lambda d, tb: (tmap(d, tb), d)   # direction -> lane block of (.., 2*Hp)

    if core_parallel:
        # v7x: run the two independent directions on the two TensorCores.
        sem = (pltpu.CORE_PARALLEL, pltpu.ARBITRARY)
    else:
        sem = ("parallel", "arbitrary")

    out_cat, hT = pl.pallas_call(
        bigru_kernel,
        out_shape=(jax.ShapeDtypeStruct((T * Bp, 2 * Hp), jnp.float32),
                   jax.ShapeDtypeStruct((2, Bp, Hp), jnp.float32)),
        grid=(2, n_tb),
        in_specs=[
            pl.BlockSpec((Tt * Bp, Hp), x_map),          # embedded inputs (time block)
            pl.BlockSpec((None, Bp, Hp), dir_map),       # h0 (per direction, resident)
            pl.BlockSpec((None, Hp, 3 * Hp), dir_map),   # W_ih^T (resident)
            pl.BlockSpec((None, Hp, 3 * Hp), dir_map),   # W_hh^T (resident)
            pl.BlockSpec((None, 1, 3 * Hp), dir_map),    # folded gi bias
            pl.BlockSpec((None, 1, Hp), dir_map),        # b_hn
        ],
        out_specs=(
            pl.BlockSpec((Tt * Bp, Hp), cat_map),        # concatenated hidden seq
            pl.BlockSpec((None, Bp, Hp), dir_map),       # final hidden (resident)
        ),
        scratch_shapes=[
            pltpu.VMEM((Bp, Hp), jnp.float32),           # carried hidden state
            pltpu.VMEM((Tt * Bp, 3 * Hp), gi_dtype),     # hoisted input projection
        ],
        compiler_params=pltpu.CompilerParams(
            dimension_semantics=sem, vmem_limit_bytes=vmem_limit),
    )(x2, h0_p, w_ih_t, w_hh_t, gib, bhn)

    # Strip padding.  When H % 128 == 0 the kernel output IS the concatenated
    # (T, B, 2H) slab (no wrapper concat, no extra HBM pass).
    out_cat = out_cat.reshape(T, Bp, 2 * Hp)[:, :B, :]
    if Hp == H:
        output = out_cat
    else:
        output = jnp.concatenate([out_cat[..., :H], out_cat[..., Hp:Hp + H]],
                                 axis=-1)
    return output, hT[:, :B, :H]


@jax.jit
def attn_encoder_forward(input_ids, hidden, params):
    """Forward pass of AttnEncoderRNN.

    input_ids: (T, B) int32 token ids
    hidden:    (2, B, H) initial hidden state
    returns:   output (T, B, 2H), hidden_out (2, B, H)
    """
    # TODO(synk): on v5e, fuse this gather into the kernel via scalar-prefetched
    # token ids (PrefetchScalarGridSpec + manual DMA gather on the embedding
    # table in pl.ANY) to save one full HBM write+read of the activations.
    emb = jnp.take(params["embedding"], input_ids, axis=0)       # (T, B, H)

    w_ih = jnp.stack([params["w_ih_f"], params["w_ih_b"]], 0)    # (2, 3H, H)
    w_hh = jnp.stack([params["w_hh_f"], params["w_hh_b"]], 0)
    b_ih = jnp.stack([params["b_ih_f"], params["b_ih_b"]], 0)    # (2, 3H)
    b_hh = jnp.stack([params["b_hh_f"], params["b_hh_b"]], 0)

    # fp32 end-to-end here so the toy test matches the fp32 reference; at
    # production sizes pass compute_dtype=jnp.bfloat16 (v6e/v7x), gi_dtype=
    # jnp.bfloat16 and core_parallel=True (v7x).
    return bigru_pallas(emb, hidden, w_ih, w_hh, b_ih, b_hh)


# ---------------- pure-JAX reference (for verification) ----------------

def gru_direction_ref(emb, h0, w_ih, w_hh, b_ih, b_hh, reverse):
    T, B, H = emb.shape
    xs = emb[::-1] if reverse else emb

    def step(h, x):
        gi = x @ w_ih.T + b_ih
        gh = h @ w_hh.T + b_hh
        i_r, i_z, i_n = gi[:, :H], gi[:, H:2 * H], gi[:, 2 * H:]
        h_r, h_z, h_n = gh[:, :H], gh[:, H:2 * H], gh[:, 2 * H:]
        r = jax.nn.sigmoid(i_r + h_r)
        z = jax.nn.sigmoid(i_z + h_z)
        n = jnp.tanh(i_n + r * h_n)
        h_new = (1.0 - z) * n + z * h
        return h_new, h_new

    h_last, ys = jax.lax.scan(step, h0, xs)
    if reverse:
        ys = ys[::-1]
    return ys, h_last


def attn_encoder_ref(input_ids, hidden, params):
    emb = jnp.take(params["embedding"], input_ids, axis=0)
    out_f, h_f = gru_direction_ref(emb, hidden[0], params["w_ih_f"],
                                   params["w_hh_f"], params["b_ih_f"],
                                   params["b_hh_f"], reverse=False)
    out_b, h_b = gru_direction_ref(emb, hidden[1], params["w_ih_b"],
                                   params["w_hh_b"], params["b_ih_b"],
                                   params["b_hh_b"], reverse=True)
    return jnp.concatenate([out_f, out_b], axis=-1), jnp.stack([h_f, h_b], 0)


# ---------------- parameter init ----------------

def init_params(key, vocab_size, hidden_size):
    H = hidden_size
    keys = jax.random.split(key, 9)
    bound = 1.0 / np.sqrt(H)
    u = lambda k, shape: jax.random.uniform(k, shape, jnp.float32, -bound, bound)
    return {
        "embedding": jax.random.normal(keys[0], (vocab_size, H), jnp.float32),
        "w_ih_f": u(keys[1], (3 * H, H)),
        "w_hh_f": u(keys[2], (3 * H, H)),
        "b_ih_f": u(keys[3], (3 * H,)),
        "b_hh_f": u(keys[4], (3 * H,)),
        "w_ih_b": u(keys[5], (3 * H, H)),
        "w_hh_b": u(keys[6], (3 * H, H)),
        "b_ih_b": u(keys[7], (3 * H,)),
        "b_hh_b": u(keys[8], (3 * H,)),
    }


if __name__ == "__main__":
    T, B, H, VOCAB = 8, 2, 32, 20     # small shapes consistent with the module

    key = jax.random.PRNGKey(0)
    k_param, k_ids = jax.random.split(key)
    params = init_params(k_param, VOCAB, H)

    input_ids = jax.random.randint(k_ids, (T, B), 0, VOCAB, dtype=jnp.int32)
    hidden0 = jnp.zeros((2, B, H), jnp.float32)   # == initHidden()

    out, hid = attn_encoder_forward(input_ids, hidden0, params)
    out = jax.block_until_ready(out)
    hid = jax.block_until_ready(hid)

    out_ref, hid_ref = attn_encoder_ref(input_ids, hidden0, params)
    np.testing.assert_allclose(np.asarray(out), np.asarray(out_ref),
                               rtol=2e-5, atol=2e-5)
    np.testing.assert_allclose(np.asarray(hid), np.asarray(hid_ref),
                               rtol=2e-5, atol=2e-5)

    assert out.shape == (T, B, 2 * H) and hid.shape == (2, B, H)
    print("KERNEL_OK")
</pallas_src>

<mosaic_0001>
module attributes {stable_mosaic.version = 11 : i64} {
  func.func @bigru_kernel(%arg0: i32, %arg1: i32, %arg2: memref<64x128xf32, #tpu.memory_space<vmem>>, %arg3: memref<1x8x128xf32, #tpu.memory_space<vmem>>, %arg4: memref<1x128x384xf32, #tpu.memory_space<vmem>>, %arg5: memref<1x128x384xf32, #tpu.memory_space<vmem>>, %arg6: memref<1x1x384xf32, #tpu.memory_space<vmem>>, %arg7: memref<1x1x128xf32, #tpu.memory_space<vmem>>, %arg8: memref<64x128xf32, #tpu.memory_space<vmem>>, %arg9: memref<1x8x128xf32, #tpu.memory_space<vmem>>, %arg10: memref<8x128xf32, #tpu.memory_space<vmem>>, %arg11: memref<64x384xf32, #tpu.memory_space<vmem>>) attributes {dimension_semantics = [#tpu.dimension_semantics<parallel>, #tpu.dimension_semantics<arbitrary>], iteration_bounds = array<i64: 2, 1>, scalar_prefetch = 0 : i64, scratch_operands = 2 : i64, tpu.core_type = #tpu.core_type<tc>, window_params = [{transform_indices = @transform_0, window_bounds = array<i64: 64, 128>}, {transform_indices = @transform_1, window_bounds = array<i64: 1, 8, 128>}, {transform_indices = @transform_2, window_bounds = array<i64: 1, 128, 384>}, {transform_indices = @transform_3, window_bounds = array<i64: 1, 128, 384>}, {transform_indices = @transform_4, window_bounds = array<i64: 1, 1, 384>}, {transform_indices = @transform_5, window_bounds = array<i64: 1, 1, 128>}, {transform_indices = @transform_6, window_bounds = array<i64: 64, 128>}, {transform_indices = @transform_7, window_bounds = array<i64: 1, 8, 128>}]} {
    %c0_i32 = arith.constant 0 : i32
    %0 = arith.cmpi eq, %arg1, %c0_i32 : i32
    %1 = arith.extui %0 : i1 to i32
    %c0_i32_0 = arith.constant 0 : i32
    %2 = arith.cmpi ne, %1, %c0_i32_0 : i32
    scf.if %2 {
      %c0_103 = arith.constant 0 : index
      %c0_104 = arith.constant 0 : index
      %c0_105 = arith.constant 0 : index
      %335 = vector.load %arg3[%c0_103, %c0_104, %c0_105] : memref<1x8x128xf32, #tpu.memory_space<vmem>>, vector<1x8x128xf32>
      %336 = vector.shape_cast %335 : vector<1x8x128xf32> to vector<8x128xf32>
      %c0_106 = arith.constant 0 : index
      %c0_107 = arith.constant 0 : index
      %337 = vector.load %arg10[%c0_106, %c0_107] : memref<8x128xf32, #tpu.memory_space<vmem>>, vector<8x128xf32>
      tpu.vector_store %arg10[%c0_106, %c0_107], %336 {strides = array<i32>} : memref<8x128xf32, #tpu.memory_space<vmem>>, vector<8x128xf32>,
    } else {
    }
    %c0 = arith.constant 0 : index
    %c0_1 = arith.constant 0 : index
    %3 = vector.load %arg2[%c0, %c0_1] : memref<64x128xf32, #tpu.memory_space<vmem>>, vector<64x128xf32>
    %c0_2 = arith.constant 0 : index
    %c0_3 = arith.constant 0 : index
    %c0_4 = arith.constant 0 : index
    %4 = vector.load %arg4[%c0_2, %c0_3, %c0_4] : memref<1x128x384xf32, #tpu.memory_space<vmem>>, vector<1x128x384xf32>
    %5 = vector.shape_cast %4 : vector<1x128x384xf32> to vector<128x384xf32>
    %cst = arith.constant dense<0.000000e+00> : vector<64x384xf32>
    %6 = tpu.matmul %3, %5, %cst {dimension_numbers = #tpu.dot_dimension_numbers<[1], [0], [0], [1], [0, 0, 1, 1], [], []>} : vector<64x128xf32>, vector<128x384xf32>, vector<64x384xf32> -> vector<64x384xf32>
    %c0_5 = arith.constant 0 : index
    %c0_6 = arith.constant 0 : index
    %c0_7 = arith.constant 0 : index
    %7 = vector.load %arg6[%c0_5, %c0_6, %c0_7] : memref<1x1x384xf32, #tpu.memory_space<vmem>>, vector<1x1x384xf32>
    %8 = vector.shape_cast %7 : vector<1x1x384xf32> to vector<1x384xf32>
    %9 = vector.broadcast %8 : vector<1x384xf32> to vector<64x384xf32>
    %10 = arith.addf %6, %9 : vector<64x384xf32>
    %c0_8 = arith.constant 0 : index
    %c0_9 = arith.constant 0 : index
    %11 = vector.load %arg11[%c0_8, %c0_9] : memref<64x384xf32, #tpu.memory_space<vmem>>, vector<64x384xf32>
    tpu.vector_store %arg11[%c0_8, %c0_9], %10 {strides = array<i32>} : memref<64x384xf32, #tpu.memory_space<vmem>>, vector<64x384xf32>,
    %c0_10 = arith.constant 0 : index
    %c0_11 = arith.constant 0 : index
    %c0_12 = arith.constant 0 : index
    %12 = vector.load %arg5[%c0_10, %c0_11, %c0_12] : memref<1x128x384xf32, #tpu.memory_space<vmem>>, vector<1x128x384xf32>
    %13 = vector.shape_cast %12 : vector<1x128x384xf32> to vector<128x384xf32>
    %c0_13 = arith.constant 0 : index
    %c0_14 = arith.constant 0 : index
    %c0_15 = arith.constant 0 : index
    %14 = vector.load %arg7[%c0_13, %c0_14, %c0_15] : memref<1x1x128xf32, #tpu.memory_space<vmem>>, vector<1x1x128xf32>
    %15 = vector.shape_cast %14 : vector<1x1x128xf32> to vector<1x128xf32>
    %16 = vector.shape_cast %15 : vector<1x128xf32> to vector<1x128xf32>
    %17 = vector.broadcast %16 : vector<1x128xf32> to vector<8x128xf32>
    %c0_16 = arith.constant 0 : index
    %c0_17 = arith.constant 0 : index
    %18 = vector.load %arg10[%c0_16, %c0_17] : memref<8x128xf32, #tpu.memory_space<vmem>>, vector<8x128xf32>
    %c0_i32_18 = arith.constant 0 : i32
    %c7_i32 = arith.constant 7 : i32
    %19 = arith.muli %arg0, %c7_i32 : i32
    %c2_i32 = arith.constant 2 : i32
    %20 = arith.muli %c2_i32, %arg0 : i32
    %c1_i32 = arith.constant 1 : i32
    %21 = arith.subi %c1_i32, %20 : i32
    %22 = arith.muli %21, %c0_i32_18 : i32
    %23 = arith.addi %19, %22 : i32
    %c8_i32 = arith.constant 8 : i32
    %24 = arith.muli %23, %c8_i32 : i32
    %25 = tpu.assume_multiple %24, 8 : i32
    %26 = arith.index_cast %25 : i32 to index
    %c0_19 = arith.constant 0 : index
    %27 = vector.load %arg11[%26, %c0_19] : memref<64x384xf32, #tpu.memory_space<vmem>>, vector<8x384xf32>
    %cst_20 = arith.constant dense<0.000000e+00> : vector<8x384xf32>
    %28 = tpu.matmul %18, %13, %cst_20 {dimension_numbers = #tpu.dot_dimension_numbers<[1], [0], [0], [1], [0, 0, 1, 1], [], []>} : vector<8x128xf32>, vector<128x384xf32>, vector<8x384xf32> -> vector<8x384xf32>
    %29 = vector.extract_strided_slice %27 {offsets = [0, 0], sizes = [8, 128], strides = [1, 1]} : vector<8x384xf32> to vector<8x128xf32>
    %30 = vector.extract_strided_slice %28 {offsets = [0, 0], sizes = [8, 128], strides = [1, 1]} : vector<8x384xf32> to vector<8x128xf32>
    %31 = arith.addf %29, %30 : vector<8x128xf32>
    %32 = arith.negf %31 : vector<8x128xf32>
    %33 = math.exp %32 : vector<8x128xf32>
    %cst_21 = arith.constant 1.000000e+00 : f32
    %34 = vector.broadcast %cst_21 : f32 to vector<8x128xf32>
    %35 = arith.addf %34, %33 : vector<8x128xf32>
    %36 = arith.divf %34, %35 : vector<8x128xf32>
    %37 = vector.extract_strided_slice %27 {offsets = [0, 128], sizes = [8, 128], strides = [1, 1]} : vector<8x384xf32> to vector<8x128xf32>
    %38 = vector.extract_strided_slice %28 {offsets = [0, 128], sizes = [8, 128], strides = [1, 1]} : vector<8x384xf32> to vector<8x128xf32>
    %39 = arith.addf %37, %38 : vector<8x128xf32>
    %40 = arith.negf %39 : vector<8x128xf32>
    %41 = math.exp %40 : vector<8x128xf32>
    %cst_22 = arith.constant 1.000000e+00 : f32
    %42 = vector.broadcast %cst_22 : f32 to vector<8x128xf32>
    %43 = arith.addf %42, %41 : vector<8x128xf32>
    %44 = arith.divf %42, %43 : vector<8x128xf32>
    %45 = vector.extract_strided_slice %27 {offsets = [0, 256], sizes = [8, 128], strides = [1, 1]} : vector<8x384xf32> to vector<8x128xf32>
    %46 = vector.extract_strided_slice %28 {offsets = [0, 256], sizes = [8, 128], strides = [1, 1]} : vector<8x384xf32> to vector<8x128xf32>
    %47 = arith.addf %46, %17 : vector<8x128xf32>
    %48 = arith.mulf %36, %47 : vector<8x128xf32>
    %49 = arith.addf %45, %48 : vector<8x128xf32>
    %50 = math.tanh %49 : vector<8x128xf32>
    %cst_23 = arith.constant 1.000000e+00 : f32
    %51 = vector.broadcast %cst_23 : f32 to vector<8x128xf32>
    %52 = arith.subf %51, %44 : vector<8x128xf32>
    %53 = arith.mulf %52, %50 : vector<8x128xf32>
    %54 = arith.mulf %44, %18 : vector<8x128xf32>
    %55 = arith.addf %53, %54 : vector<8x128xf32>
    %56 = arith.index_cast %25 : i32 to index
    %c0_24 = arith.constant 0 : index
    %57 = vector.load %arg8[%56, %c0_24] : memref<64x128xf32, #tpu.memory_space<vmem>>, vector<8x128xf32>
    tpu.vector_store %arg8[%56, %c0_24], %55 {strides = array<i32>} : memref<64x128xf32, #tpu.memory_space<vmem>>, vector<8x128xf32>,
    %c1_i32_25 = arith.constant 1 : i32
    %c7_i32_26 = arith.constant 7 : i32
    %58 = arith.muli %arg0, %c7_i32_26 : i32
    %c2_i32_27 = arith.constant 2 : i32
    %59 = arith.muli %c2_i32_27, %arg0 : i32
    %c1_i32_28 = arith.constant 1 : i32
    %60 = arith.subi %c1_i32_28, %59 : i32
    %61 = arith.muli %60, %c1_i32_25 : i32
    %62 = arith.addi %58, %61 : i32
    %c8_i32_29 = arith.constant 8 : i32
    %63 = arith.muli %62, %c8_i32_29 : i32
    %64 = tpu.assume_multiple %63, 8 : i32
    %65 = arith.index_cast %64 : i32 to index
    %c0_30 = arith.constant 0 : index
    %66 = vector.load %arg11[%65, %c0_30] : memref<64x384xf32, #tpu.memory_space<vmem>>, vector<8x384xf32>
    %cst_31 = arith.constant dense<0.000000e+00> : vector<8x384xf32>
    %67 = tpu.matmul %55, %13, %cst_31 {dimension_numbers = #tpu.dot_dimension_numbers<[1], [0], [0], [1], [0, 0, 1, 1], [], []>} : vector<8x128xf32>, vector<128x384xf32>, vector<8x384xf32> -> vector<8x384xf32>
    %68 = vector.extract_strided_slice %66 {offsets = [0, 0], sizes = [8, 128], strides = [1, 1]} : vector<8x384xf32> to vector<8x128xf32>
    %69 = vector.extract_strided_slice %67 {offsets = [0, 0], sizes = [8, 128], strides = [1, 1]} : vector<8x384xf32> to vector<8x128xf32>
    %70 = arith.addf %68, %69 : vector<8x128xf32>
    %71 = arith.negf %70 : vector<8x128xf32>
    %72 = math.exp %71 : vector<8x128xf32>
    %cst_32 = arith.constant 1.000000e+00 : f32
    %73 = vector.broadcast %cst_32 : f32 to vector<8x128xf32>
    %74 = arith.addf %73, %72 : vector<8x128xf32>
    %75 = arith.divf %73, %74 : vector<8x128xf32>
    %76 = vector.extract_strided_slice %66 {offsets = [0, 128], sizes = [8, 128], strides = [1, 1]} : vector<8x384xf32> to vector<8x128xf32>
    %77 = vector.extract_strided_slice %67 {offsets = [0, 128], sizes = [8, 128], strides = [1, 1]} : vector<8x384xf32> to vector<8x128xf32>
    %78 = arith.addf %76, %77 : vector<8x128xf32>
    %79 = arith.negf %78 : vector<8x128xf32>
    %80 = math.exp %79 : vector<8x128xf32>
    %cst_33 = arith.constant 1.000000e+00 : f32
    %81 = vector.broadcast %cst_33 : f32 to vector<8x128xf32>
    %82 = arith.addf %81, %80 : vector<8x128xf32>
    %83 = arith.divf %81, %82 : vector<8x128xf32>
    %84 = vector.extract_strided_slice %66 {offsets = [0, 256], sizes = [8, 128], strides = [1, 1]} : vector<8x384xf32> to vector<8x128xf32>
    %85 = vector.extract_strided_slice %67 {offsets = [0, 256], sizes = [8, 128], strides = [1, 1]} : vector<8x384xf32> to vector<8x128xf32>
    %86 = arith.addf %85, %17 : vector<8x128xf32>
    %87 = arith.mulf %75, %86 : vector<8x128xf32>
    %88 = arith.addf %84, %87 : vector<8x128xf32>
    %89 = math.tanh %88 : vector<8x128xf32>
    %cst_34 = arith.constant 1.000000e+00 : f32
    %90 = vector.broadcast %cst_34 : f32 to vector<8x128xf32>
    %91 = arith.subf %90, %83 : vector<8x128xf32>
    %92 = arith.mulf %91, %89 : vector<8x128xf32>
    %93 = arith.mulf %83, %55 : vector<8x128xf32>
    %94 = arith.addf %92, %93 : vector<8x128xf32>
    %95 = arith.index_cast %64 : i32 to index
    %c0_35 = arith.constant 0 : index
    %96 = vector.load %arg8[%95, %c0_35] : memref<64x128xf32, #tpu.memory_space<vmem>>, vector<8x128xf32>
    tpu.vector_store %arg8[%95, %c0_35], %94 {strides = array<i32>} : memref<64x128xf32, #tpu.memory_space<vmem>>, vector<8x128xf32>,
    %c2_i32_36 = arith.constant 2 : i32
    %c7_i32_37 = arith.constant 7 : i32
    %97 = arith.muli %arg0, %c7_i32_37 : i32
    %c2_i32_38 = arith.constant 2 : i32
    %98 = arith.muli %c2_i32_38, %arg0 : i32
    %c1_i32_39 = arith.constant 1 : i32
    %99 = arith.subi %c1_i32_39, %98 : i32
    %100 = arith.muli %99, %c2_i32_36 : i32
    %101 = arith.addi %97, %100 : i32
    %c8_i32_40 = arith.constant 8 : i32
    %102 = arith.muli %101, %c8_i32_40 : i32
    %103 = tpu.assume_multiple %102, 8 : i32
    %104 = arith.index_cast %103 : i32 to index
    %c0_41 = arith.constant 0 : index
    %105 = vector.load %arg11[%104, %c0_41] : memref<64x384xf32, #tpu.memory_space<vmem>>, vector<8x384xf32>
    %cst_42 = arith.constant dense<0.000000e+00> : vector<8x384xf32>
    %106 = tpu.matmul %94, %13, %cst_42 {dimension_numbers = #tpu.dot_dimension_numbers<[1], [0], [0], [1], [0, 0, 1, 1], [], []>} : vector<8x128xf32>, vector<128x384xf32>, vector<8x384xf32> -> vector<8x384xf32>
    %107 = vector.extract_strided_slice %105 {offsets = [0, 0], sizes = [8, 128], strides = [1, 1]} : vector<8x384xf32> to vector<8x128xf32>
    %108 = vector.extract_strided_slice %106 {offsets = [0, 0], sizes = [8, 128], strides = [1, 1]} : vector<8x384xf32> to vector<8x128xf32>
    %109 = arith.addf %107, %108 : vector<8x128xf32>
    %110 = arith.negf %109 : vector<8x128xf32>
    %111 = math.exp %110 : vector<8x128xf32>
    %cst_43 = arith.constant 1.000000e+00 : f32
    %112 = vector.broadcast %cst_43 : f32 to vector<8x128xf32>
    %113 = arith.addf %112, %111 : vector<8x128xf32>
    %114 = arith.divf %112, %113 : vector<8x128xf32>
    %115 = vector.extract_strided_slice %105 {offsets = [0, 128], sizes = [8, 128], strides = [1, 1]} : vector<8x384xf32> to vector<8x128xf32>
    %116 = vector.extract_strided_slice %106 {offsets = [0, 128], sizes = [8, 128], strides = [1, 1]} : vector<8x384xf32> to vector<8x128xf32>
    %117 = arith.addf %115, %116 : vector<8x128xf32>
    %118 = arith.negf %117 : vector<8x128xf32>
    %119 = math.exp %118 : vector<8x128xf32>
    %cst_44 = arith.constant 1.000000e+00 : f32
    %120 = vector.broadcast %cst_44 : f32 to vector<8x128xf32>
    %121 = arith.addf %120, %119 : vector<8x128xf32>
    %122 = arith.divf %120, %121 : vector<8x128xf32>
    %123 = vector.extract_strided_slice %105 {offsets = [0, 256], sizes = [8, 128], strides = [1, 1]} : vector<8x384xf32> to vector<8x128xf32>
    %124 = vector.extract_strided_slice %106 {offsets = [0, 256], sizes = [8, 128], strides = [1, 1]} : vector<8x384xf32> to vector<8x128xf32>
    %125 = arith.addf %124, %17 : vector<8x128xf32>
    %126 = arith.mulf %114, %125 : vector<8x128xf32>
    %127 = arith.addf %123, %126 : vector<8x128xf32>
    %128 = math.tanh %127 : vector<8x128xf32>
    %cst_45 = arith.constant 1.000000e+00 : f32
    %129 = vector.broadcast %cst_45 : f32 to vector<8x128xf32>
    %130 = arith.subf %129, %122 : vector<8x128xf32>
    %131 = arith.mulf %130, %128 : vector<8x128xf32>
    %132 = arith.mulf %122, %94 : vector<8x128xf32>
    %133 = arith.addf %131, %132 : vector<8x128xf32>
    %134 = arith.index_cast %103 : i32 to index
    %c0_46 = arith.constant 0 : index
    %135 = vector.load %arg8[%134, %c0_46] : memref<64x128xf32, #tpu.memory_space<vmem>>, vector<8x128xf32>
    tpu.vector_store %arg8[%134, %c0_46], %133 {strides = array<i32>} : memref<64x128xf32, #tpu.memory_space<vmem>>, vector<8x128xf32>,
    %c3_i32 = arith.constant 3 : i32
    %c7_i32_47 = arith.constant 7 : i32
    %136 = arith.muli %arg0, %c7_i32_47 : i32
    %c2_i32_48 = arith.constant 2 : i32
    %137 = arith.muli %c2_i32_48, %arg0 : i32
    %c1_i32_49 = arith.constant 1 : i32
    %138 = arith.subi %c1_i32_49, %137 : i32
    %139 = arith.muli %138, %c3_i32 : i32
    %140 = arith.addi %136, %139 : i32
    %c8_i32_50 = arith.constant 8 : i32
    %141 = arith.muli %140, %c8_i32_50 : i32
    %142 = tpu.assume_multiple %141, 8 : i32
    %143 = arith.index_cast %142 : i32 to index
    %c0_51 = arith.constant 0 : index
    %144 = vector.load %arg11[%143, %c0_51] : memref<64x384xf32, #tpu.memory_space<vmem>>, vector<8x384xf32>
    %cst_52 = arith.constant dense<0.000000e+00> : vector<8x384xf32>
    %145 = tpu.matmul %133, %13, %cst_52 {dimension_numbers = #tpu.dot_dimension_numbers<[1], [0], [0], [1], [0, 0, 1, 1], [], []>} : vector<8x128xf32>, vector<128x384xf32>, vector<8x384xf32> -> vector<8x384xf32>
    %146 = vector.extract_strided_slice %144 {offsets = [0, 0], sizes = [8, 128], strides = [1, 1]} : vector<8x384xf32> to vector<8x128xf32>
    %147 = vector.extract_strided_slice %145 {offsets = [0, 0], sizes = [8, 128], strides = [1, 1]} : vector<8x384xf32> to vector<8x128xf32>
    %148 = arith.addf %146, %147 : vector<8x128xf32>
    %149 = arith.negf %148 : vector<8x128xf32>
    %150 = math.exp %149 : vector<8x128xf32>
    %cst_53 = arith.constant 1.000000e+00 : f32
    %151 = vector.broadcast %cst_53 : f32 to vector<8x128xf32>
    %152 = arith.addf %151, %150 : vector<8x128xf32>
    %153 = arith.divf %151, %152 : vector<8x128xf32>
    %154 = vector.extract_strided_slice %144 {offsets = [0, 128], sizes = [8, 128], strides = [1, 1]} : vector<8x384xf32> to vector<8x128xf32>
    %155 = vector.extract_strided_slice %145 {offsets = [0, 128], sizes = [8, 128], strides = [1, 1]} : vector<8x384xf32> to vector<8x128xf32>
    %156 = arith.addf %154, %155 : vector<8x128xf32>
    %157 = arith.negf %156 : vector<8x128xf32>
    %158 = math.exp %157 : vector<8x128xf32>
    %cst_54 = arith.constant 1.000000e+00 : f32
    %159 = vector.broadcast %cst_54 : f32 to vector<8x128xf32>
    %160 = arith.addf %159, %158 : vector<8x128xf32>
    %161 = arith.divf %159, %160 : vector<8x128xf32>
    %162 = vector.extract_strided_slice %144 {offsets = [0, 256], sizes = [8, 128], strides = [1, 1]} : vector<8x384xf32> to vector<8x128xf32>
    %163 = vector.extract_strided_slice %145 {offsets = [0, 256], sizes = [8, 128], strides = [1, 1]} : vector<8x384xf32> to vector<8x128xf32>
    %164 = arith.addf %163, %17 : vector<8x128xf32>
    %165 = arith.mulf %153, %164 : vector<8x128xf32>
    %166 = arith.addf %162, %165 : vector<8x128xf32>
    %167 = math.tanh %166 : vector<8x128xf32>
    %cst_55 = arith.constant 1.000000e+00 : f32
    %168 = vector.broadcast %cst_55 : f32 to vector<8x128xf32>
    %169 = arith.subf %168, %161 : vector<8x128xf32>
    %170 = arith.mulf %169, %167 : vector<8x128xf32>
    %171 = arith.mulf %161, %133 : vector<8x128xf32>
    %172 = arith.addf %170, %171 : vector<8x128xf32>
    %173 = arith.index_cast %142 : i32 to index
    %c0_56 = arith.constant 0 : index
    %174 = vector.load %arg8[%173, %c0_56] : memref<64x128xf32, #tpu.memory_space<vmem>>, vector<8x128xf32>
    tpu.vector_store %arg8[%173, %c0_56], %172 {strides = array<i32>} : memref<64x128xf32, #tpu.memory_space<vmem>>, vector<8x128xf32>,
    %c4_i32 = arith.constant 4 : i32
    %c7_i32_57 = arith.constant 7 : i32
    %175 = arith.muli %arg0, %c7_i32_57 : i32
    %c2_i32_58 = arith.constant 2 : i32
    %176 = arith.muli %c2_i32_58, %arg0 : i32
    %c1_i32_59 = arith.constant 1 : i32
    %177 = arith.subi %c1_i32_59, %176 : i32
    %178 = arith.muli %177, %c4_i32 : i32
    %179 = arith.addi %175, %178 : i32
    %c8_i32_60 = arith.constant 8 : i32
    %180 = arith.muli %179, %c8_i32_60 : i32
    %181 = tpu.assume_multiple %180, 8 : i32
    %182 = arith.index_cast %181 : i32 to index
    %c0_61 = arith.constant 0 : index
    %183 = vector.load %arg11[%182, %c0_61] : memref<64x384xf32, #tpu.memory_space<vmem>>, vector<8x384xf32>
    %cst_62 = arith.constant dense<0.000000e+00> : vector<8x384xf32>
    %184 = tpu.matmul %172, %13, %cst_62 {dimension_numbers = #tpu.dot_dimension_numbers<[1], [0], [0], [1], [0, 0, 1, 1], [], []>} : vector<8x128xf32>, vector<128x384xf32>, vector<8x384xf32> -> vector<8x384xf32>
    %185 = vector.extract_strided_slice %183 {offsets = [0, 0], sizes = [8, 128], strides = [1, 1]} : vector<8x384xf32> to vector<8x128xf32>
    %186 = vector.extract_strided_slice %184 {offsets = [0, 0], sizes = [8, 128], strides = [1, 1]} : vector<8x384xf32> to vector<8x128xf32>
    %187 = arith.addf %185, %186 : vector<8x128xf32>
    %188 = arith.negf %187 : vector<8x128xf32>
    %189 = math.exp %188 : vector<8x128xf32>
    %cst_63 = arith.constant 1.000000e+00 : f32
    %190 = vector.broadcast %cst_63 : f32 to vector<8x128xf32>
    %191 = arith.addf %190, %189 : vector<8x128xf32>
    %192 = arith.divf %190, %191 : vector<8x128xf32>
    %193 = vector.extract_strided_slice %183 {offsets = [0, 128], sizes = [8, 128], strides = [1, 1]} : vector<8x384xf32> to vector<8x128xf32>
    %194 = vector.extract_strided_slice %184 {offsets = [0, 128], sizes = [8, 128], strides = [1, 1]} : vector<8x384xf32> to vector<8x128xf32>
    %195 = arith.addf %193, %194 : vector<8x128xf32>
    %196 = arith.negf %195 : vector<8x128xf32>
    %197 = math.exp %196 : vector<8x128xf32>
    %cst_64 = arith.constant 1.000000e+00 : f32
    %198 = vector.broadcast %cst_64 : f32 to vector<8x128xf32>
    %199 = arith.addf %198, %197 : vector<8x128xf32>
    %200 = arith.divf %198, %199 : vector<8x128xf32>
    %201 = vector.extract_strided_slice %183 {offsets = [0, 256], sizes = [8, 128], strides = [1, 1]} : vector<8x384xf32> to vector<8x128xf32>
    %202 = vector.extract_strided_slice %184 {offsets = [0, 256], sizes = [8, 128], strides = [1, 1]} : vector<8x384xf32> to vector<8x128xf32>
    %203 = arith.addf %202, %17 : vector<8x128xf32>
    %204 = arith.mulf %192, %203 : vector<8x128xf32>
    %205 = arith.addf %201, %204 : vector<8x128xf32>
    %206 = math.tanh %205 : vector<8x128xf32>
    %cst_65 = arith.constant 1.000000e+00 : f32
    %207 = vector.broadcast %cst_65 : f32 to vector<8x128xf32>
    %208 = arith.subf %207, %200 : vector<8x128xf32>
    %209 = arith.mulf %208, %206 : vector<8x128xf32>
    %210 = arith.mulf %200, %172 : vector<8x128xf32>
    %211 = arith.addf %209, %210 : vector<8x128xf32>
    %212 = arith.index_cast %181 : i32 to index
    %c0_66 = arith.constant 0 : index
    %213 = vector.load %arg8[%212, %c0_66] : memref<64x128xf32, #tpu.memory_space<vmem>>, vector<8x128xf32>
    tpu.vector_store %arg8[%212, %c0_66], %211 {strides = array<i32>} : memref<64x128xf32, #tpu.memory_space<vmem>>, vector<8x128xf32>,
    %c5_i32 = arith.constant 5 : i32
    %c7_i32_67 = arith.constant 7 : i32
    %214 = arith.muli %arg0, %c7_i32_67 : i32
    %c2_i32_68 = arith.constant 2 : i32
    %215 = arith.muli %c2_i32_68, %arg0 : i32
    %c1_i32_69 = arith.constant 1 : i32
    %216 = arith.subi %c1_i32_69, %215 : i32
    %217 = arith.muli %216, %c5_i32 : i32
    %218 = arith.addi %214, %217 : i32
    %c8_i32_70 = arith.constant 8 : i32
    %219 = arith.muli %218, %c8_i32_70 : i32
    %220 = tpu.assume_multiple %219, 8 : i32
    %221 = arith.index_cast %220 : i32 to index
    %c0_71 = arith.constant 0 : index
    %222 = vector.load %arg11[%221, %c0_71] : memref<64x384xf32, #tpu.memory_space<vmem>>, vector<8x384xf32>
    %cst_72 = arith.constant dense<0.000000e+00> : vector<8x384xf32>
    %223 = tpu.matmul %211, %13, %cst_72 {dimension_numbers = #tpu.dot_dimension_numbers<[1], [0], [0], [1], [0, 0, 1, 1], [], []>} : vector<8x128xf32>, vector<128x384xf32>, vector<8x384xf32> -> vector<8x384xf32>
    %224 = vector.extract_strided_slice %222 {offsets = [0, 0], sizes = [8, 128], strides = [1, 1]} : vector<8x384xf32> to vector<8x128xf32>
    %225 = vector.extract_strided_slice %223 {offsets = [0, 0], sizes = [8, 128], strides = [1, 1]} : vector<8x384xf32> to vector<8x128xf32>
    %226 = arith.addf %224, %225 : vector<8x128xf32>
    %227 = arith.negf %226 : vector<8x128xf32>
    %228 = math.exp %227 : vector<8x128xf32>
    %cst_73 = arith.constant 1.000000e+00 : f32
    %229 = vector.broadcast %cst_73 : f32 to vector<8x128xf32>
    %230 = arith.addf %229, %228 : vector<8x128xf32>
    %231 = arith.divf %229, %230 : vector<8x128xf32>
    %232 = vector.extract_strided_slice %222 {offsets = [0, 128], sizes = [8, 128], strides = [1, 1]} : vector<8x384xf32> to vector<8x128xf32>
    %233 = vector.extract_strided_slice %223 {offsets = [0, 128], sizes = [8, 128], strides = [1, 1]} : vector<8x384xf32> to vector<8x128xf32>
    %234 = arith.addf %232, %233 : vector<8x128xf32>
    %235 = arith.negf %234 : vector<8x128xf32>
    %236 = math.exp %235 : vector<8x128xf32>
    %cst_74 = arith.constant 1.000000e+00 : f32
    %237 = vector.broadcast %cst_74 : f32 to vector<8x128xf32>
    %238 = arith.addf %237, %236 : vector<8x128xf32>
    %239 = arith.divf %237, %238 : vector<8x128xf32>
    %240 = vector.extract_strided_slice %222 {offsets = [0, 256], sizes = [8, 128], strides = [1, 1]} : vector<8x384xf32> to vector<8x128xf32>
    %241 = vector.extract_strided_slice %223 {offsets = [0, 256], sizes = [8, 128], strides = [1, 1]} : vector<8x384xf32> to vector<8x128xf32>
    %242 = arith.addf %241, %17 : vector<8x128xf32>
    %243 = arith.mulf %231, %242 : vector<8x128xf32>
    %244 = arith.addf %240, %243 : vector<8x128xf32>
    %245 = math.tanh %244 : vector<8x128xf32>
    %cst_75 = arith.constant 1.000000e+00 : f32
    %246 = vector.broadcast %cst_75 : f32 to vector<8x128xf32>
    %247 = arith.subf %246, %239 : vector<8x128xf32>
    %248 = arith.mulf %247, %245 : vector<8x128xf32>
    %249 = arith.mulf %239, %211 : vector<8x128xf32>
    %250 = arith.addf %248, %249 : vector<8x128xf32>
    %251 = arith.index_cast %220 : i32 to index
    %c0_76 = arith.constant 0 : index
    %252 = vector.load %arg8[%251, %c0_76] : memref<64x128xf32, #tpu.memory_space<vmem>>, vector<8x128xf32>
    tpu.vector_store %arg8[%251, %c0_76], %250 {strides = array<i32>} : memref<64x128xf32, #tpu.memory_space<vmem>>, vector<8x128xf32>,
    %c6_i32 = arith.constant 6 : i32
    %c7_i32_77 = arith.constant 7 : i32
    %253 = arith.muli %arg0, %c7_i32_77 : i32
    %c2_i32_78 = arith.constant 2 : i32
    %254 = arith.muli %c2_i32_78, %arg0 : i32
    %c1_i32_79 = arith.constant 1 : i32
    %255 = arith.subi %c1_i32_79, %254 : i32
    %256 = arith.muli %255, %c6_i32 : i32
    %257 = arith.addi %253, %256 : i32
    %c8_i32_80 = arith.constant 8 : i32
    %258 = arith.muli %257, %c8_i32_80 : i32
    %259 = tpu.assume_multiple %258, 8 : i32
    %260 = arith.index_cast %259 : i32 to index
    %c0_81 = arith.constant 0 : index
    %261 = vector.load %arg11[%260, %c0_81] : memref<64x384xf32, #tpu.memory_space<vmem>>, vector<8x384xf32>
    %cst_82 = arith.constant dense<0.000000e+00> : vector<8x384xf32>
    %262 = tpu.matmul %250, %13, %cst_82 {dimension_numbers = #tpu.dot_dimension_numbers<[1], [0], [0], [1], [0, 0, 1, 1], [], []>} : vector<8x128xf32>, vector<128x384xf32>, vector<8x384xf32> -> vector<8x384xf32>
    %263 = vector.extract_strided_slice %261 {offsets = [0, 0], sizes = [8, 128], strides = [1, 1]} : vector<8x384xf32> to vector<8x128xf32>
    %264 = vector.extract_strided_slice %262 {offsets = [0, 0], sizes = [8, 128], strides = [1, 1]} : vector<8x384xf32> to vector<8x128xf32>
    %265 = arith.addf %263, %264 : vector<8x128xf32>
    %266 = arith.negf %265 : vector<8x128xf32>
    %267 = math.exp %266 : vector<8x128xf32>
    %cst_83 = arith.constant 1.000000e+00 : f32
    %268 = vector.broadcast %cst_83 : f32 to vector<8x128xf32>
    %269 = arith.addf %268, %267 : vector<8x128xf32>
    %270 = arith.divf %268, %269 : vector<8x128xf32>
    %271 = vector.extract_strided_slice %261 {offsets = [0, 128], sizes = [8, 128], strides = [1, 1]} : vector<8x384xf32> to vector<8x128xf32>
    %272 = vector.extract_strided_slice %262 {offsets = [0, 128], sizes = [8, 128], strides = [1, 1]} : vector<8x384xf32> to vector<8x128xf32>
    %273 = arith.addf %271, %272 : vector<8x128xf32>
    %274 = arith.negf %273 : vector<8x128xf32>
    %275 = math.exp %274 : vector<8x128xf32>
    %cst_84 = arith.constant 1.000000e+00 : f32
    %276 = vector.broadcast %cst_84 : f32 to vector<8x128xf32>
    %277 = arith.addf %276, %275 : vector<8x128xf32>
    %278 = arith.divf %276, %277 : vector<8x128xf32>
    %279 = vector.extract_strided_slice %261 {offsets = [0, 256], sizes = [8, 128], strides = [1, 1]} : vector<8x384xf32> to vector<8x128xf32>
    %280 = vector.extract_strided_slice %262 {offsets = [0, 256], sizes = [8, 128], strides = [1, 1]} : vector<8x384xf32> to vector<8x128xf32>
    %281 = arith.addf %280, %17 : vector<8x128xf32>
    %282 = arith.mulf %270, %281 : vector<8x128xf32>
    %283 = arith.addf %279, %282 : vector<8x128xf32>
    %284 = math.tanh %283 : vector<8x128xf32>
    %cst_85 = arith.constant 1.000000e+00 : f32
    %285 = vector.broadcast %cst_85 : f32 to vector<8x128xf32>
    %286 = arith.subf %285, %278 : vector<8x128xf32>
    %287 = arith.mulf %286, %284 : vector<8x128xf32>
    %288 = arith.mulf %278, %250 : vector<8x128xf32>
    %289 = arith.addf %287, %288 : vector<8x128xf32>
    %290 = arith.index_cast %259 : i32 to index
    %c0_86 = arith.constant 0 : index
    %291 = vector.load %arg8[%290, %c0_86] : memref<64x128xf32, #tpu.memory_space<vmem>>, vector<8x128xf32>
    tpu.vector_store %arg8[%290, %c0_86], %289 {strides = array<i32>} : memref<64x128xf32, #tpu.memory_space<vmem>>, vector<8x128xf32>,
    %c7_i32_87 = arith.constant 7 : i32
    %c7_i32_88 = arith.constant 7 : i32
    %292 = arith.muli %arg0, %c7_i32_88 : i32
    %c2_i32_89 = arith.constant 2 : i32
    %293 = arith.muli %c2_i32_89, %arg0 : i32
    %c1_i32_90 = arith.constant 1 : i32
    %294 = arith.subi %c1_i32_90, %293 : i32
    %295 = arith.muli %294, %c7_i32_87 : i32
    %296 = arith.addi %292, %295 : i32
    %c8_i32_91 = arith.constant 8 : i32
    %297 = arith.muli %296, %c8_i32_91 : i32
    %298 = tpu.assume_multiple %297, 8 : i32
    %299 = arith.index_cast %298 : i32 to index
    %c0_92 = arith.constant 0 : index
    %300 = vector.load %arg11[%299, %c0_92] : memref<64x384xf32, #tpu.memory_space<vmem>>, vector<8x384xf32>
    %cst_93 = arith.constant dense<0.000000e+00> : vector<8x384xf32>
    %301 = tpu.matmul %289, %13, %cst_93 {dimension_numbers = #tpu.dot_dimension_numbers<[1], [0], [0], [1], [0, 0, 1, 1], [], []>} : vector<8x128xf32>, vector<128x384xf32>, vector<8x384xf32> -> vector<8x384xf32>
    %302 = vector.extract_strided_slice %300 {offsets = [0, 0], sizes = [8, 128], strides = [1, 1]} : vector<8x384xf32> to vector<8x128xf32>
    %303 = vector.extract_strided_slice %301 {offsets = [0, 0], sizes = [8, 128], strides = [1, 1]} : vector<8x384xf32> to vector<8x128xf32>
    %304 = arith.addf %302, %303 : vector<8x128xf32>
    %305 = arith.negf %304 : vector<8x128xf32>
    %306 = math.exp %305 : vector<8x128xf32>
    %cst_94 = arith.constant 1.000000e+00 : f32
    %307 = vector.broadcast %cst_94 : f32 to vector<8x128xf32>
    %308 = arith.addf %307, %306 : vector<8x128xf32>
    %309 = arith.divf %307, %308 : vector<8x128xf32>
    %310 = vector.extract_strided_slice %300 {offsets = [0, 128], sizes = [8, 128], strides = [1, 1]} : vector<8x384xf32> to vector<8x128xf32>
    %311 = vector.extract_strided_slice %301 {offsets = [0, 128], sizes = [8, 128], strides = [1, 1]} : vector<8x384xf32> to vector<8x128xf32>
    %312 = arith.addf %310, %311 : vector<8x128xf32>
    %313 = arith.negf %312 : vector<8x128xf32>
    %314 = math.exp %313 : vector<8x128xf32>
    %cst_95 = arith.constant 1.000000e+00 : f32
    %315 = vector.broadcast %cst_95 : f32 to vector<8x128xf32>
    %316 = arith.addf %315, %314 : vector<8x128xf32>
    %317 = arith.divf %315, %316 : vector<8x128xf32>
    %318 = vector.extract_strided_slice %300 {offsets = [0, 256], sizes = [8, 128], strides = [1, 1]} : vector<8x384xf32> to vector<8x128xf32>
    %319 = vector.extract_strided_slice %301 {offsets = [0, 256], sizes = [8, 128], strides = [1, 1]} : vector<8x384xf32> to vector<8x128xf32>
    %320 = arith.addf %319, %17 : vector<8x128xf32>
    %321 = arith.mulf %309, %320 : vector<8x128xf32>
    %322 = arith.addf %318, %321 : vector<8x128xf32>
    %323 = math.tanh %322 : vector<8x128xf32>
    %cst_96 = arith.constant 1.000000e+00 : f32
    %324 = vector.broadcast %cst_96 : f32 to vector<8x128xf32>
    %325 = arith.subf %324, %317 : vector<8x128xf32>
    %326 = arith.mulf %325, %323 : vector<8x128xf32>
    %327 = arith.mulf %317, %289 : vector<8x128xf32>
    %328 = arith.addf %326, %327 : vector<8x128xf32>
    %329 = arith.index_cast %298 : i32 to index
    %c0_97 = arith.constant 0 : index
    %330 = vector.load %arg8[%329, %c0_97] : memref<64x128xf32, #tpu.memory_space<vmem>>, vector<8x128xf32>
    tpu.vector_store %arg8[%329, %c0_97], %328 {strides = array<i32>} : memref<64x128xf32, #tpu.memory_space<vmem>>, vector<8x128xf32>,
    %c8_i32_98 = arith.constant 8 : i32
    %c0_99 = arith.constant 0 : index
    %c0_100 = arith.constant 0 : index
    %331 = vector.load %arg10[%c0_99, %c0_100] : memref<8x128xf32, #tpu.memory_space<vmem>>, vector<8x128xf32>
    tpu.vector_store %arg10[%c0_99, %c0_100], %328 {strides = array<i32>} : memref<8x128xf32, #tpu.memory_space<vmem>>, vector<8x128xf32>,
    %c0_i32_101 = arith.constant 0 : i32
    %332 = arith.cmpi eq, %arg1, %c0_i32_101 : i32
    %333 = arith.extui %332 : i1 to i32
    %c0_i32_102 = arith.constant 0 : i32
    %334 = arith.cmpi ne, %333, %c0_i32_102 : i32
    scf.if %334 {
      %c0_103 = arith.constant 0 : index
      %c0_104 = arith.constant 0 : index
      %c0_105 = arith.constant 0 : index
      %335 = vector.load %arg9[%c0_103, %c0_104, %c0_105] : memref<1x8x128xf32, #tpu.memory_space<vmem>>, vector<1x8x128xf32>
      %336 = vector.shape_cast %335 : vector<1x8x128xf32> to vector<8x128xf32>
      %337 = vector.shape_cast %328 : vector<8x128xf32> to vector<1x8x128xf32>
      tpu.vector_store %arg9[%c0_103, %c0_104, %c0_105], %337 {strides = array<i32>} : memref<1x8x128xf32, #tpu.memory_space<vmem>>, vector<1x8x128xf32>,
    } else {
    }
    return
  }
  func.func @transform_0(%arg0: i32, %arg1: i32) -> (i32, i32) {
    %c0_i32 = arith.constant 0 : i32
    %0 = arith.muli %arg0, %c0_i32 : i32
    %c2_i32 = arith.constant 2 : i32
    %1 = arith.muli %c2_i32, %arg0 : i32
    %c1_i32 = arith.constant 1 : i32
    %2 = arith.subi %c1_i32, %1 : i32
    %3 = arith.muli %2, %arg1 : i32
    %4 = arith.addi %0, %3 : i32
    %c0_i32_0 = arith.constant 0 : i32
    %c0_i32_1 = arith.constant 0 : i32
    return %4, %c0_i32_0 : i32, i32
  }
  func.func @transform_1(%arg0: i32, %arg1: i32) -> (i32, i32, i32) {
    %c0_i32 = arith.constant 0 : i32
    %c0_i32_0 = arith.constant 0 : i32
    %c0_i32_1 = arith.constant 0 : i32
    return %arg0, %c0_i32, %c0_i32_0 : i32, i32, i32
  }
  func.func @transform_2(%arg0: i32, %arg1: i32) -> (i32, i32, i32) {
    %c0_i32 = arith.constant 0 : i32
    %c0_i32_0 = arith.constant 0 : i32
    %c0_i32_1 = arith.constant 0 : i32
    return %arg0, %c0_i32, %c0_i32_0 : i32, i32, i32
  }
  func.func @transform_3(%arg0: i32, %arg1: i32) -> (i32, i32, i32) {
    %c0_i32 = arith.constant 0 : i32
    %c0_i32_0 = arith.constant 0 : i32
    %c0_i32_1 = arith.constant 0 : i32
    return %arg0, %c0_i32, %c0_i32_0 : i32, i32, i32
  }
  func.func @transform_4(%arg0: i32, %arg1: i32) -> (i32, i32, i32) {
    %c0_i32 = arith.constant 0 : i32
    %c0_i32_0 = arith.constant 0 : i32
    %c0_i32_1 = arith.constant 0 : i32
    return %arg0, %c0_i32, %c0_i32_0 : i32, i32, i32
  }
  func.func @transform_5(%arg0: i32, %arg1: i32) -> (i32, i32, i32) {
    %c0_i32 = arith.constant 0 : i32
    %c0_i32_0 = arith.constant 0 : i32
    %c0_i32_1 = arith.constant 0 : i32
    return %arg0, %c0_i32, %c0_i32_0 : i32, i32, i32
  }
  func.func @transform_6(%arg0: i32, %arg1: i32) -> (i32, i32) {
    %c0_i32 = arith.constant 0 : i32
    %0 = arith.muli %arg0, %c0_i32 : i32
    %c2_i32 = arith.constant 2 : i32
    %1 = arith.muli %c2_i32, %arg0 : i32
    %c1_i32 = arith.constant 1 : i32
    %2 = arith.subi %c1_i32, %1 : i32
    %3 = arith.muli %2, %arg1 : i32
    %4 = arith.addi %0, %3 : i32
    %c0_i32_0 = arith.constant 0 : i32
    return %4, %arg0 : i32, i32
  }
  func.func @transform_7(%arg0: i32, %arg1: i32) -> (i32, i32, i32) {
    %c0_i32 = arith.constant 0 : i32
    %c0_i32_0 = arith.constant 0 : i32
    %c0_i32_1 = arith.constant 0 : i32
    return %arg0, %c0_i32, %c0_i32_0 : i32, i32, i32
  }
}

</mosaic_0001>

<bundles_post_ra>
// kernel: attn_encoder_forward.1
= control target key start
LH: loop header
LB: loop body
LE: loop exit
PB: predicated region body
PF: predicated region fallthrough
CT: control target
= control target key end

     0   :  { %s3317_s0 = inlined_call_operand.vmem [shape: f32[64,128], index: 0, kind: input, shape index: {}]   ;;  %s3318_s1 = inlined_call_operand.vmem [shape: f32[2,8,128], index: 1, kind: input, shape index: {}]   ;;  %s3319_s2 = inlined_call_operand.vmem [shape: f32[2,128,384], index: 2, kind: input, shape index: {}]   ;;  %s3320_s3 = inlined_call_operand.vmem [shape: f32[2,128,384], index: 3, kind: input, shape index: {}]   ;;  %s3321_s4 = inlined_call_operand.vmem [shape: f32[2,1,384], index: 4, kind: input, shape index: {}]   ;;  %s3322_s5 = inlined_call_operand.vmem [shape: f32[2,1,128], index: 5, kind: input, shape index: {}]   ;;  %s3323_s6 = inlined_call_operand.vmem [shape: f32[64,256], index: 6, kind: output, shape index: {0}]   ;;  %s3324_s7 = inlined_call_operand.vmem [shape: f32[2,8,128], index: 7, kind: output, shape index: {1}]  }
   0x1   :  { %3345 = sst [smem:[#allocation11_spill]] %s3317_s0 }
   0x2   :  { %3346 = sst [smem:[#allocation12_spill]] %s3318_s1 }
   0x3   :  { %s2254_s24 = smov 0   ;;  %s2256_s25 = smov 0  }
   0x4   :  { %s2258_s26 = smov 0   ;;  %s2260_s27 = smov 0  }
   0x5   :  { %s2262_s28 = smov 0  }
   0x6 LB: > { %s1939_s29 = sadd.s32 4294967295, %s2212_s28   ;;  %s30_s30 = sadd.s32 1, %s2208_s27  ;;  %s2212_s28 = sphi %s2262_s28, %s18_s28   ;;  %s2208_s27 = sphi %s2260_s27, %s3379_s27   ;;  %s2204_s26 = sphi %s2258_s26, %s3378_s26   ;;  %s2200_s25 = sphi %s2256_s25, %s3377_s25   ;;  %s2196_s24 = sphi %s2254_s24, %s3376_s24  }
   0x7   : > { %p32_p0 = scmp.ge.s32.totalorder %s30_s30, 2  ;;  %s207_s8 = sadd.s32 1, %s2200_s25 }
   0x8   : > { %p217_p1 = scmp.ne.s32.totalorder %s2200_s25, %s2196_s24  ;;  %p218_p2 = scmp.eq.s32.totalorder %s1939_s29, 1 }
   0x9   : > { %s3381_s30 = smov (%p32_p0, %s30_s30), 0  ;;  %p1948_p4 = scmp.ge.s32.totalorder %s2212_s28, 1 }
   0xa   : > { %p2286_p3 = por %p218_p2, %p217_p1  ;;  %s203_s10 = ssub.s32 %s2208_s27, %s3381_s30 }
   0xb   : > { %p319_p5 = scmp.lt.s32.totalorder %s2212_s28, 3  ;;  %p205_p6 = scmp.eq.s32.totalorder %s203_s10, 0 }
   0xd   : > { %p320_p7 = pnand %p1948_p4, %p319_p5 }
   0xe   : > { %s2295_s11 = scalar_select %p205_p6, %s2200_s25, %s207_s8  }
   0xf   : > { %323 = sbr.rel (%p320_p7) target bundleno = 1533 (0x5fd), region = 44 }
  0x14   : > { %p390_p8 = scmp.lt.s32.totalorder %s2204_s26, 1  ;;  %s3348_s0 = sld [smem:[#allocation11_spill]] }
  0x15   : > { %s3351_s1 = sld [smem:[#allocation12_spill]]  ;;  %s1958_s14 = sshll.u32 %s2204_s26, 1 }
  0x16   : > { %s2299_s12 = scalar_select %p390_p8, %s2204_s26, 1 }
  0x17   : > { %s2642_s15 = ssub.s32 1, %s1958_s14 }
  0x18   : > { %s2002_s13 = smul.u32 384, %s2299_s12  ;;  %s3325_s10 = sshll.u32 %s2299_s12, 3 }
  0x19   : > { %s1052_s18 = smul.u32 3, %s2642_s15  ;;  %s1972_s22 = sshll.u32 %s2642_s15, 2 }
  0x1a   : > { %s2307_s16 = scalar_lea.vmem %s3319_s2, %s2002_s13  ;;  %s2335_s19 = scalar_lea.vmem %s3320_s3, %s2002_s13  ;;  %v425_v54 = vld [vmem:[%s3348_s0] sm:$0xff]  ;;  %v426_v62 = vld [vmem:[%s3348_s0 + $0x8] sm:$0xff] }
  0x1b   : > { %v480_v0 = vld [vmem:[%s2307_s16 + $0x178] sm:$0xff]  ;;  %v477_v1 = vld [vmem:[%s2307_s16 + $0x160] sm:$0xff]  ;;  %v478_v2 = vld [vmem:[%s2307_s16 + $0x168] sm:$0xff]  ;;  %s393_s17 = scalar_lea.vmem %s3351_s1, %s3325_s10  ;;  %s1294_s29 = smul.u32 5, %s2642_s15 }
  0x1c   : > { %571 = vmatpush.msra.mxu2 %v480_v0  ;;  %v479_v3 = vld [vmem:[%s2307_s16 + $0x170] sm:$0xff]  ;;  %v474_v4 = vld [vmem:[%s2307_s16 + $0x148] sm:$0xff]  ;;  %489 = vmatpush.msra.mxu0 %v478_v2  ;;  %v476_v6 = vld [vmem:[%s2307_s16 + $0x158] sm:$0xff]  ;;  %s1415_s13 = smul.u32 6, %s2642_s15 }
  0x1d   : > { %530 = vmatpush.msra.mxu1 %v479_v3  ;;  %v475_v5 = vld [vmem:[%s2307_s16 + $0x150] sm:$0xff]  ;;  %v472_v7 = vld [vmem:[%s2307_s16 + $0x138] sm:$0xff]  ;;  %v473_v8 = vld [vmem:[%s2307_s16 + $0x140] sm:$0xff] }
  0x1e   : > { %572 = vmatpush.msra.mxu2 %v477_v1  ;;  %v471_v9 = vld [vmem:[%s2307_s16 + $0x130] sm:$0xff]  ;;  %490 = vmatpush.msra.mxu0 %v475_v5  ;;  %v469_v10 = vld [vmem:[%s2307_s16 + $0x120] sm:$0xff]  ;;  %v470_v11 = vld [vmem:[%s2307_s16 + $0x128] sm:$0xff] }
  0x1f   : > { %531 = vmatpush.msra.mxu1 %v476_v6  ;;  %v468_v12 = vld [vmem:[%s2307_s16 + $0x118] sm:$0xff]  ;;  %v466_v13 = vld [vmem:[%s2307_s16 + $0x108] sm:$0xff]  ;;  %v467_v14 = vld [vmem:[%s2307_s16 + $0x110] sm:$0xff] }
  0x20   : > { %573 = vmatpush.msra.mxu2 %v474_v4  ;;  %491 = vmatpush.msra.mxu0 %v472_v7  ;;  %v465_v15 = vld [vmem:[%s2307_s16 + $0x100] sm:$0xff]  ;;  %v463_v16 = vld [vmem:[%s2307_s16 + $0xf0] sm:$0xff]  ;;  %v464_v17 = vld [vmem:[%s2307_s16 + $0xf8] sm:$0xff] }
  0x21   : > { %532 = vmatpush.msra.mxu1 %v473_v8  ;;  %v462_v18 = vld [vmem:[%s2307_s16 + $0xe8] sm:$0xff]  ;;  %v460_v19 = vld [vmem:[%s2307_s16 + $0xd8] sm:$0xff]  ;;  %v461_v20 = vld [vmem:[%s2307_s16 + $0xe0] sm:$0xff] }
  0x22   : > { %574 = vmatpush.msra.mxu2 %v471_v9  ;;  %492 = vmatpush.msra.mxu0 %v469_v10  ;;  %v459_v21 = vld [vmem:[%s2307_s16 + $0xd0] sm:$0xff]  ;;  %v457_v22 = vld [vmem:[%s2307_s16 + $0xc0] sm:$0xff]  ;;  %v458_v23 = vld [vmem:[%s2307_s16 + $0xc8] sm:$0xff] }
  0x23   : > { %533 = vmatpush.msra.mxu1 %v470_v11  ;;  %v456_v24 = vld [vmem:[%s2307_s16 + $0xb8] sm:$0xff]  ;;  %v454_v25 = vld [vmem:[%s2307_s16 + $0xa8] sm:$0xff]  ;;  %v455_v26 = vld [vmem:[%s2307_s16 + $0xb0] sm:$0xff] }
  0x24   : > { %575 = vmatpush.msra.mxu2 %v468_v12  ;;  %493 = vmatpush.msra.mxu0 %v466_v13  ;;  %v2344_v27 = vld [vmem:[%s2335_s19 + $0x168] sm:$0xff]  ;;  %v453_v28 = vld [vmem:[%s2307_s16 + $0xa0] sm:$0xff]  ;;  %v2348_v29 = vld [vmem:[%s2335_s19 + $0x150] sm:$0xff] }
  0x25   : > { %534 = vmatpush.msra.mxu1 %v467_v14  ;;  %v451_v30 = vld [vmem:[%s2307_s16 + $0x90] sm:$0xff]  ;;  %v452_v31 = vld [vmem:[%s2307_s16 + $0x98] sm:$0xff]  ;;  %698 = vmatpush.msra.mxu3 %v2344_v27  ;;  %v450_v32 = vld [vmem:[%s2307_s16 + $0x88] sm:$0xff] }
  0x26   : > { %576 = vmatpush.msra.mxu2 %v465_v15  ;;  %494 = vmatpush.msra.mxu0 %v463_v16  ;;  %v2355_v33 = vld [vmem:[%s2335_s19 + $0x138] sm:$0xff]  ;;  %v449_v35 = vld [vmem:[%s2307_s16 + $0x80] sm:$0xff]  ;;  %v447_v36 = vld [vmem:[%s2307_s16 + $0x70] sm:$0xff] }
  0x27   : > { %535 = vmatpush.msra.mxu1 %v464_v17  ;;  %v448_v34 = vld [vmem:[%s2307_s16 + $0x78] sm:$0xff]  ;;  %699 = vmatpush.msra.mxu3 %v2348_v29  ;;  %v2362_v37 = vld [vmem:[%s2335_s19 + $0x120] sm:$0xff]  ;;  %v446_v39 = vld [vmem:[%s2307_s16 + $0x68] sm:$0xff] }
  0x28   : > { %577 = vmatpush.msra.mxu2 %v462_v18  ;;  %495 = vmatpush.msra.mxu0 %v460_v19  ;;  %v445_v38 = vld [vmem:[%s2307_s16 + $0x60] sm:$0xff]  ;;  %v444_v40 = vld [vmem:[%s2307_s16 + $0x58] sm:$0xff]  ;;  %v2369_v41 = vld [vmem:[%s2335_s19 + $0x108] sm:$0xff] }
  0x29   : > { %536 = vmatpush.msra.mxu1 %v461_v20  ;;  %700 = vmatpush.msra.mxu3 %v2355_v33  ;;  %v442_v42 = vld [vmem:[%s2307_s16 + $0x48] sm:$0xff]  ;;  %v443_v43 = vld [vmem:[%s2307_s16 + $0x50] sm:$0xff]  ;;  %v441_v44 = vld [vmem:[%s2307_s16 + $0x40] sm:$0xff] }
  0x2a   : > { %578 = vmatpush.msra.mxu2 %v459_v21  ;;  %496 = vmatpush.msra.mxu0 %v457_v22  ;;  %v2376_v45 = vld [vmem:[%s2335_s19 + $0xf0] sm:$0xff]  ;;  %v440_v47 = vld [vmem:[%s2307_s16 + $0x38] sm:$0xff]  ;;  %v438_v48 = vld [vmem:[%s2307_s16 + $0x28] sm:$0xff] }
  0x2b   : > { %537 = vmatpush.msra.mxu1 %v458_v23  ;;  %701 = vmatpush.msra.mxu3 %v2362_v37  ;;  %v439_v46 = vld [vmem:[%s2307_s16 + $0x30] sm:$0xff]  ;;  %v2383_v49 = vld [vmem:[%s2335_s19 + $0xd8] sm:$0xff]  ;;  %v437_v51 = vld [vmem:[%s2307_s16 + $0x20] sm:$0xff] }
  0x2c   : > { %579 = vmatpush.msra.mxu2 %v456_v24  ;;  %497 = vmatpush.msra.mxu0 %v454_v25  ;;  %v436_v50 = vld [vmem:[%s2307_s16 + $0x18] sm:$0xff]  ;;  %v435_v52 = vld [vmem:[%s2307_s16 + $0x10] sm:$0xff]  ;;  %v2390_v53 = vld [vmem:[%s2335_s19 + $0xc0] sm:$0xff] }
  0x2d   : > { %538 = vmatpush.msra.mxu1 %v455_v26  ;;  %702 = vmatpush.msra.mxu3 %v2369_v41  ;;  %v433_v55 = vld [vmem:[%s2307_s16] sm:$0xff]  ;;  %v434_v56 = vld [vmem:[%s2307_s16 + $0x8] sm:$0xff]  ;;  %v2403_v58 = vld [vmem:[%s2335_s19 + $0x178] sm:$0xff]  ;;  %s2649_s16 = smul.u32 7, %s2204_s26 }
  0x2e   : > { %580 = vmatpush.msra.mxu2 %v453_v28  ;;  %498 = vmatpush.msra.mxu0 %v451_v30  ;;  %v2400_v57 = vld [vmem:[%s2335_s19 + $0xa8] sm:$0xff]  ;;  %v2406_v59 = vld [vmem:[%s2335_s19 + $0x90] sm:$0xff]  ;;  %v2410_v60 = vld [vmem:[%s2335_s19 + $0x78] sm:$0xff] }
  0x2f   : > { %539 = vmatpush.msra.mxu1 %v452_v31  ;;  %703 = vmatpush.msra.mxu3 %v2376_v45  ;;  %v2413_v61 = vld [vmem:[%s2335_s19 + $0x170] sm:$0xff]  ;;  %v2423_v63 = vld [vmem:[%s2335_s19 + $0x60] sm:$0xff]  ;;  %v2426_v0 = vld [vmem:[%s2335_s19 + $0x158] sm:$0xff]  ;;  %s2669_s21 = sadd.s32 %s1052_s18, %s2649_s16  ;;  %s2681_s23 = sadd.s32 %s1972_s22, %s2649_s16 }
  0x30   : > { %581 = vmatpush.msra.mxu2 %v450_v32  ;;  %499 = vmatpush.msra.mxu0 %v448_v34  ;;  %v2432_v1 = vld [vmem:[%s2335_s19 + $0x48] sm:$0xff]  ;;  %v2437_v2 = vld [vmem:[%s2335_s19 + $0x140] sm:$0xff]  ;;  %v2443_v4 = vld [vmem:[%s2335_s19 + $0x30] sm:$0xff]  ;;  %s2690_s8 = sadd.s32 %s1294_s29, %s2649_s16  ;;  %s2701_s14 = sadd.s32 %s1415_s13, %s2649_s16 }
  0x31   : > { %540 = vmatpush.msra.mxu1 %v449_v35  ;;  %704 = vmatpush.msra.mxu3 %v2383_v49  ;;  %v2440_v3 = vld [vmem:[%s2335_s19 + $0x160] sm:$0xff]  ;;  %v2448_v5 = vld [vmem:[%s2335_s19 + $0x148] sm:$0xff]  ;;  %v2451_v6 = vld [vmem:[%s2335_s19 + $0x18] sm:$0xff]  ;;  %s2734_s13 = scalar_lea.vmem %s3322_s5, %s2299_s12 }
  0x32   : > { %582 = vmatpush.msra.mxu2 %v447_v36  ;;  %500 = vmatpush.msra.mxu0 %v445_v38  ;;  %3349 = vst [vmem:[#allocation5_spill] sm:$0xff] %v2451_v6  ;;  %v2455_v7 = vld [vmem:[%s2335_s19 + $0x128] sm:$0xff]  ;;  %v427_v8 = vld [vmem:[%s3348_s0 + $0x10] sm:$0xff]  ;;  %v2464_v9 = vld [vmem:[%s2335_s19] sm:$0xff] }
  0x33   : > { %541 = vmatpush.msra.mxu1 %v446_v39  ;;  %705 = vmatpush.msra.mxu3 %v2390_v53  ;;  %3350 = vst [vmem:[#allocation6_spill] sm:$0xff] %v2464_v9  ;;  %v2467_v10 = vld [vmem:[%s2335_s19 + $0x110] sm:$0xff]  ;;  %v2480_v12 = vld [vmem:[%s2335_s19 + $0x118] sm:$0xff]  ;;  %v2490_v14 = vld [vmem:[%s2335_s19 + $0xe0] sm:$0xff] }
  0x34   : > { %583 = vmatpush.msra.mxu2 %v444_v40  ;;  %501 = vmatpush.msra.mxu0 %v442_v42  ;;  %v2476_v11 = vld [vmem:[%s2335_s19 + $0x130] sm:$0xff]  ;;  %v2483_v13 = vld [vmem:[%s2335_s19 + $0xf8] sm:$0xff]  ;;  %v2500_v16 = vld [vmem:[%s2335_s19 + $0xc8] sm:$0xff] }
  0x35   : > { %542 = vmatpush.msra.mxu1 %v443_v43  ;;  %706 = vmatpush.msra.mxu3 %v2400_v57  ;;  %v428_v15 = vld [vmem:[%s3348_s0 + $0x18] sm:$0xff]  ;;  %v2511_v17 = vld [vmem:[%s2335_s19 + $0x100] sm:$0xff]  ;;  %v2518_v19 = vld [vmem:[%s2335_s19 + $0xe8] sm:$0xff] }
  0x36   : > { %584 = vmatpush.msra.mxu2 %v441_v44  ;;  %502 = vmatpush.msra.mxu0 %v439_v46  ;;  %v2515_v18 = vld [vmem:[%s393_s17] sm:$0xff]  ;;  %v2521_v20 = vld [vmem:[%s2335_s19 + $0xb0] sm:$0xff]  ;;  %v2536_v23 = vld [vmem:[%s2335_s19 + $0x98] sm:$0xff]  ;;  %s1963_s17 = sshll.u32 %s2642_s15, 1 }
  0x37   : > { %543 = vmatpush.msra.mxu1 %v440_v47  ;;  %707 = vmatpush.msra.mxu3 %v2406_v59  ;;  %v2526_v21 = vld [vmem:[%s2335_s19 + $0xd0] sm:$0xff]  ;;  %v429_v22 = vld [vmem:[%s3348_s0 + $0x20] sm:$0xff]  ;;  %v2539_v24 = vld [vmem:[%s2335_s19 + $0xb8] sm:$0xff]  ;;  %s2659_s20 = sadd.s32 %s1963_s17, %s2649_s16  ;;  %s1536_s17 = smul.u32 7, %s2642_s15 }
  0x38   : > { %585 = vmatpush.msra.mxu2 %v438_v48  ;;  %503 = vmatpush.msra.mxu0 %v436_v50  ;;  %v2546_v25 = vld [vmem:[%s2335_s19 + $0xa0] sm:$0xff]  ;;  %v2552_v26 = vld [vmem:[%s2335_s19 + $0x88] sm:$0xff]  ;;  %v2560_v30 = vld [vmem:[%s2335_s19 + $0x70] sm:$0xff] }
  0x39   : > { %544 = vmatpush.msra.mxu1 %v437_v51  ;;  %708 = vmatpush.msra.mxu3 %v2410_v60  ;;  %v2555_v28 = vld [vmem:[%s2335_s19 + $0x80] sm:$0xff]  ;;  %v2564_v31 = vld [vmem:[%s2335_s19 + $0x68] sm:$0xff]  ;;  %v2573_v34 = vld [vmem:[%s2335_s19 + $0x58] sm:$0xff]  ;;  %s2710_s18 = sadd.s32 %s1536_s17, %s2649_s16  ;;  %s2003_s17 = smul.u32 3, %s2299_s12 }
  0x3a   : > { %586 = vmatpush.msra.mxu2 %v435_v52  ;;  %504 = vmatpush.msra.mxu0 %v433_v55  ;;  %v430_v32 = vld [vmem:[%s3348_s0 + $0x28] sm:$0xff]  ;;  %v2577_v35 = vld [vmem:[%s2335_s19 + $0x50] sm:$0xff]  ;;  %v2583_v36 = vld [vmem:[%s2335_s19 + $0x40] sm:$0xff] }
  0x3b   : > { %587 = vmatmul.f32.vlgmr.msra.gmra.mxu2 %v425_v54  ;;  %545 = vmatpush.msra.mxu1 %v434_v56  ;;  %v2587_v38 = vld [vmem:[%s2335_s19 + $0x38] sm:$0xff]  ;;  %v2592_v39 = vld [vmem:[%s2335_s19 + $0x28] sm:$0xff]  ;;  %v2595_v40 = vld [vmem:[%s2335_s19 + $0x20] sm:$0xff]  ;;  %s407_s10 = scalar_lea.vmem %s3321_s4, %s2003_s17 }
  0x3c   : > { %505 = vmatmul.f32.vlgmr.msra.gmra.mxu0 %v425_v54  ;;  %546 = vmatmul.f32.vlgmr.msra.gmra.mxu1 %v425_v54  ;;  %3352 = vst [vmem:[#allocation7_spill] sm:$0xff] %v2592_v39  ;;  %v2600_v42 = vld [vmem:[%s2335_s19 + $0x10] sm:$0xff]  ;;  %v2604_v43 = vld [vmem:[%s2335_s19 + $0x8] sm:$0xff]  ;;  %v432_v46 = vld [vmem:[%s3348_s0 + $0x38] sm:$0xff] }
  0x3d   : > { %738 = vmatpush.msrb.mxu0 %v2403_v58  ;;  %821 = vmatpush.msrb.mxu1 %v2344_v27  ;;  %3353 = vst [vmem:[#allocation8_spill] sm:$0xff] %v2595_v40  ;;  %v431_v44 = vld [vmem:[%s3348_s0 + $0x30] sm:$0xff]  ;;  %v481_v47 = vld [vmem:[%s407_s10] sm:$0x7]  ;;  %s3336_s10 = smul.u32 56, %s2204_s26 }
  0x3e   : > { %841 = vmatpush.msrb.mxu2 %v2413_v61  ;;  %709 = vmatpush.msra.mxu3 %v2423_v63  ;;  %3354 = vst [vmem:[#allocation9_spill] sm:$0xff] %v2600_v42  ;;  %v2759_v48 = vperm.slane %v481_v47, 0  ;;  %v2761_v50 = vperm.slane %v481_v47, 1  ;;  %v2765_v56 = vperm.slane %v481_v47, 2  ;;  %s3356_s0 = smul.u32 56, %s2204_s26 }
  0x3f   : > { %822 = vmatpush.msrb.mxu1 %v2348_v29  ;;  %739 = vmatpush.msrb.mxu0 %v2440_v3  ;;  %3355 = vst [vmem:[#allocation10_spill] sm:$0xff] %v2604_v43  ;;  %s690_s17 = sshra.s32 %s3336_s10, 3 }
  0x40   : > { %842 = vmatpush.msrb.mxu2 %v2426_v0  ;;  %710 = vmatpush.msra.mxu3 %v2432_v1  ;;  %s1994_s22 = smul.u32 24, %s690_s17  ;;  %s369_s17 = sand.u32 1, %s2196_s24  }
  0x41   : > { %823 = vmatpush.msrb.mxu1 %v2355_v33  ;;  %740 = vmatpush.msrb.mxu0 %v2448_v5 }
  0x42   : > { %843 = vmatpush.msrb.mxu2 %v2437_v2  ;;  %711 = vmatpush.msra.mxu3 %v2443_v4  ;;  %s2792_s29 = scalar_lea.vmem [#allocation3], %s1994_s22  ;;  %s1949_s22 = sshll.u32 %s369_s17, 6 }
  0x43   : > { %590 = vmatmul.f32.gmra.mxu2 %v426_v62  ;;  %824 = vmatpush.msrb.mxu1 %v2362_v37  ;;  %s2803_s10 = scalar_lea.vmem [#allocation4], %s1949_s22 }
  0x44   : > { %508 = vmatmul.f32.gmra.mxu0 %v426_v62  ;;  %549 = vmatmul.f32.gmra.mxu1 %v426_v62  ;;  %s806_s1 = scalar_lea.vmem %s2803_s10, %s3356_s0 [#allocation4]  ;;  %s811_s0 = sadd.s32 %s2642_s15, %s2649_s16 }
  0x45   : > { %844 = vmatpush.msrb.mxu2 %v2455_v7  ;;  %825 = vmatpush.msrb.mxu1 %v2369_v41  ;;  %s1964_s16 = sshll.u32 %s2659_s20, 3  ;;  %s1968_s20 = sshll.u32 %s2669_s21, 3 }
  0x46   : > { %712 = vmatpush.msra.mxu3 %v2451_v6  ;;  %741 = vmatpush.msrb.mxu0 %v2476_v11  ;;  %s934_s22 = sshra.s32 %s1964_s16, 3  ;;  %s1973_s21 = sshll.u32 %s2681_s23, 3 }
  0x47   : > { %845 = vmatpush.msrb.mxu2 %v2467_v10  ;;  %826 = vmatpush.msrb.mxu1 %v2376_v45  ;;  %s1977_s23 = sshll.u32 %s2690_s8, 3 }
  0x48   : > { %713 = vmatpush.msra.mxu3 %v2464_v9  ;;  %742 = vmatpush.msrb.mxu0 %v2480_v12 }
  0x49   : > { %846 = vmatpush.msrb.mxu2 %v2483_v13  ;;  %827 = vmatpush.msrb.mxu1 %v2383_v49 }
  0x4a   : > { %718 = vmatpush.msrb.mxu3 %v2413_v61  ;;  %743 = vmatpush.msrb.mxu0 %v2511_v17 }
  0x4b   : > { %593 = vmatmul.f32.gmra.mxu2 %v427_v8  ;;  %828 = vmatpush.msrb.mxu1 %v2390_v53 }
  0x4c   : > { %511 = vmatmul.f32.gmra.mxu0 %v427_v8  ;;  %552 = vmatmul.f32.gmra.mxu1 %v427_v8 }
  0x4d   : > { %719 = vmatpush.msrb.mxu3 %v2426_v0  ;;  %847 = vmatpush.msrb.mxu2 %v2490_v14 }
  0x4e   : > { %829 = vmatpush.msrb.mxu1 %v2400_v57  ;;  %714 = vmatmul.f32.vlgmr.msra.gmra.mxu3 %v2515_v18 }
  0x4f   : > { %720 = vmatpush.msrb.mxu3 %v2437_v2  ;;  %848 = vmatpush.msrb.mxu2 %v2500_v16 }
  0x50   : > { %744 = vmatpush.msrb.mxu0 %v2518_v19  ;;  %830 = vmatpush.msrb.mxu1 %v2406_v59 }
  0x51   : > { %721 = vmatpush.msrb.mxu3 %v2455_v7  ;;  %849 = vmatpush.msrb.mxu2 %v2521_v20 }
  0x52   : > { %745 = vmatpush.msrb.mxu0 %v2526_v21  ;;  %831 = vmatpush.msrb.mxu1 %v2410_v60 }
  0x53   : > { %596 = vmatmul.f32.gmra.mxu2 %v428_v15  ;;  %722 = vmatpush.msrb.mxu3 %v2467_v10 }
  0x54   : > { %514 = vmatmul.f32.gmra.mxu0 %v428_v15  ;;  %555 = vmatmul.f32.gmra.mxu1 %v428_v15 }
  0x55   : > { %723 = vmatpush.msrb.mxu3 %v2483_v13  ;;  %850 = vmatpush.msrb.mxu2 %v2536_v23 }
  0x56   : > { %746 = vmatpush.msrb.mxu0 %v2539_v24  ;;  %832 = vmatpush.msrb.mxu1 %v2423_v63 }
  0x57   : > { %724 = vmatpush.msrb.mxu3 %v2490_v14  ;;  %851 = vmatpush.msrb.mxu2 %v2555_v28 }
  0x58   : > { %747 = vmatpush.msrb.mxu0 %v2546_v25  ;;  %833 = vmatpush.msrb.mxu1 %v2432_v1 }
  0x59   : > { %725 = vmatpush.msrb.mxu3 %v2500_v16  ;;  %852 = vmatpush.msrb.mxu2 %v2564_v31 }
  0x5a   : > { %748 = vmatpush.msrb.mxu0 %v2552_v26  ;;  %834 = vmatpush.msrb.mxu1 %v2443_v4 }
  0x5b   : > { %599 = vmatmul.f32.gmra.mxu2 %v429_v22  ;;  %726 = vmatpush.msrb.mxu3 %v2521_v20 }
  0x5c   : > { %517 = vmatmul.f32.gmra.mxu0 %v429_v22  ;;  %558 = vmatmul.f32.gmra.mxu1 %v429_v22 }
  0x5d   : > { %727 = vmatpush.msrb.mxu3 %v2536_v23  ;;  %749 = vmatpush.msrb.mxu0 %v2560_v30 }
  0x5e   : > { %853 = vmatpush.msrb.mxu2 %v2577_v35  ;;  %835 = vmatpush.msrb.mxu1 %v2451_v6 }
  0x5f   : > { %728 = vmatpush.msrb.mxu3 %v2555_v28  ;;  %750 = vmatpush.msrb.mxu0 %v2573_v34 }
  0x60   : > { %854 = vmatpush.msrb.mxu2 %v2587_v38  ;;  %836 = vmatpush.msrb.mxu1 %v2464_v9 }
  0x61   : > { %729 = vmatpush.msrb.mxu3 %v2564_v31  ;;  %751 = vmatpush.msrb.mxu0 %v2583_v36 }
  0x62   : > { %855 = vmatpush.msrb.mxu2 %v2595_v40  ;;  %962 = vmatpush.msra.mxu1 %v2413_v61 }
  0x63   : > { %602 = vmatmul.f32.gmra.mxu2 %v430_v32  ;;  %730 = vmatpush.msrb.mxu3 %v2577_v35 }
  0x64   : > { %520 = vmatmul.f32.gmra.mxu0 %v430_v32  ;;  %561 = vmatmul.f32.gmra.mxu1 %v430_v32 }
  0x65   : > { %731 = vmatpush.msrb.mxu3 %v2587_v38  ;;  %752 = vmatpush.msrb.mxu0 %v2592_v39 }
  0x66   : > { %856 = vmatpush.msrb.mxu2 %v2604_v43  ;;  %963 = vmatpush.msra.mxu1 %v2426_v0 }
  0x67   : > { %732 = vmatpush.msrb.mxu3 %v2595_v40  ;;  %753 = vmatpush.msrb.mxu0 %v2600_v42 }
  0x68   : > { %982 = vmatpush.msra.mxu2 %v2403_v58  ;;  %964 = vmatpush.msra.mxu1 %v2437_v2 }
  0x69   : > { %733 = vmatpush.msrb.mxu3 %v2604_v43  ;;  %942 = vmatpush.msra.mxu0 %v2344_v27 }
  0x6a   : > { %734 = vmatmul.f32.vlgmr.msrb.gmra.mxu3 %v2515_v18  ;;  %983 = vmatpush.msra.mxu2 %v2440_v3 }
  0x6b   : > { %605 = vmatmul.f32.gmra.mxu2 %v431_v44  ;;  %861 = vmatpush.msra.mxu3 %v2403_v58 }
  0x6c   : > { %523 = vmatmul.f32.gmra.mxu0 %v431_v44  ;;  %564 = vmatmul.f32.gmra.mxu1 %v431_v44 }
  0x6d   : > { %862 = vmatpush.msra.mxu3 %v2440_v3  ;;  %943 = vmatpush.msra.mxu0 %v2348_v29 }
  0x6e   : > { %984 = vmatpush.msra.mxu2 %v2448_v5  ;;  %965 = vmatpush.msra.mxu1 %v2455_v7 }
  0x6f   : > { %863 = vmatpush.msra.mxu3 %v2448_v5  ;;  %944 = vmatpush.msra.mxu0 %v2355_v33 }
  0x70   : > { %985 = vmatpush.msra.mxu2 %v2476_v11  ;;  %966 = vmatpush.msra.mxu1 %v2467_v10 }
  0x71   : > { %864 = vmatpush.msra.mxu3 %v2476_v11  ;;  %945 = vmatpush.msra.mxu0 %v2362_v37 }
  0x72   : > { %986 = vmatpush.msra.mxu2 %v2480_v12  ;;  %967 = vmatpush.msra.mxu1 %v2483_v13 }
  0x73   : > { %608 = vmatmul.f32.gmra.mxu2 %v432_v46  ;;  %865 = vmatpush.msra.mxu3 %v2480_v12 }
  0x74   : > { %526 = vmatmul.f32.gmra.mxu0 %v432_v46  ;;  %567 = vmatmul.f32.gmra.mxu1 %v432_v46 }
  0x75   : > { %866 = vmatpush.msra.mxu3 %v2511_v17  ;;  %946 = vmatpush.msra.mxu0 %v2369_v41 }
  0x76   : > { %987 = vmatpush.msra.mxu2 %v2511_v17  ;;  %968 = vmatpush.msra.mxu1 %v2490_v14 }
  0x77   : > { %867 = vmatpush.msra.mxu3 %v2518_v19  ;;  %947 = vmatpush.msra.mxu0 %v2376_v45 }
  0x78   : > { %988 = vmatpush.msra.mxu2 %v2518_v19  ;;  %969 = vmatpush.msra.mxu1 %v2500_v16 }
  0x79   : > { %868 = vmatpush.msra.mxu3 %v2526_v21  ;;  %948 = vmatpush.msra.mxu0 %v2383_v49 }
  0x7a   : > { %989 = vmatpush.msra.mxu2 %v2526_v21  ;;  %970 = vmatpush.msra.mxu1 %v2521_v20 }
  0x7b   : > { %869 = vmatpush.msra.mxu3 %v2539_v24  ;;  %949 = vmatpush.msra.mxu0 %v2390_v53 }
  0x7c   : > { %754 = vmatmul.f32.vlgmr.msrb.gmra.mxu0 %v2515_v18  ;;  %990 = vmatpush.msra.mxu2 %v2539_v24 }
  0x7d   : > { %870 = vmatpush.msra.mxu3 %v2546_v25  ;;  %950 = vmatpush.msra.mxu0 %v2400_v57 }
  0x7e   : > { %971 = vmatpush.msra.mxu1 %v2536_v23  ;;  %991 = vmatpush.msra.mxu2 %v2546_v25 }
  0x7f   : > { %871 = vmatpush.msra.mxu3 %v2552_v26  ;;  %951 = vmatpush.msra.mxu0 %v2406_v59 }
  0x80   : > { %972 = vmatpush.msra.mxu1 %v2555_v28  ;;  %992 = vmatpush.msra.mxu2 %v2552_v26 }
  0x81   : > { %872 = vmatpush.msra.mxu3 %v2560_v30  ;;  %952 = vmatpush.msra.mxu0 %v2410_v60 }
  0x82   : > { %973 = vmatpush.msra.mxu1 %v2564_v31  ;;  %993 = vmatpush.msra.mxu2 %v2560_v30 }
  0x83   : > { %873 = vmatpush.msra.mxu3 %v2573_v34  ;;  %953 = vmatpush.msra.mxu0 %v2423_v63 }
  0x84   : > { %974 = vmatpush.msra.mxu1 %v2577_v35  ;;  %994 = vmatpush.msra.mxu2 %v2573_v34 }
  0x85   : > { %874 = vmatpush.msra.mxu3 %v2583_v36  ;;  %954 = vmatpush.msra.mxu0 %v2432_v1 }
  0x86   : > { %975 = vmatpush.msra.mxu1 %v2587_v38  ;;  %995 = vmatpush.msra.mxu2 %v2583_v36 }
  0x87   : > { %875 = vmatpush.msra.mxu3 %v2592_v39  ;;  %955 = vmatpush.msra.mxu0 %v2443_v4 }
  0x88   : > { %976 = vmatpush.msra.mxu1 %v2595_v40  ;;  %996 = vmatpush.msra.mxu2 %v2592_v39 }
  0x89   : > { %876 = vmatpush.msra.mxu3 %v2600_v42  ;;  %956 = vmatpush.msra.mxu0 %v2451_v6 }
  0x8a   : > { %977 = vmatpush.msra.mxu1 %v2604_v43  ;;  %997 = vmatpush.msra.mxu2 %v2600_v42 }
  0x8b   : > { %1063 = vmatpush.msrb.mxu3 %v2344_v27  ;;  %957 = vmatpush.msra.mxu0 %v2464_v9 }
  0x8d   : > { %1064 = vmatpush.msrb.mxu3 %v2348_v29  ;;  %1083 = vmatpush.msrb.mxu0 %v2413_v61 }
  0x8f   : > { %1065 = vmatpush.msrb.mxu3 %v2355_v33  ;;  %1084 = vmatpush.msrb.mxu0 %v2426_v0 }
  0x91   : > { %1066 = vmatpush.msrb.mxu3 %v2362_v37  ;;  %1085 = vmatpush.msrb.mxu0 %v2437_v2 }
  0x93   : > { %1067 = vmatpush.msrb.mxu3 %v2369_v41  ;;  %1086 = vmatpush.msrb.mxu0 %v2455_v7 }
  0x95   : > { %1068 = vmatpush.msrb.mxu3 %v2376_v45  ;;  %1087 = vmatpush.msrb.mxu0 %v2467_v10 }
  0x97   : > { %1069 = vmatpush.msrb.mxu3 %v2383_v49  ;;  %1088 = vmatpush.msrb.mxu0 %v2483_v13 }
  0x99   : > { %1070 = vmatpush.msrb.mxu3 %v2390_v53  ;;  %1089 = vmatpush.msrb.mxu0 %v2490_v14 }
  0x9b   : > { %1071 = vmatpush.msrb.mxu3 %v2400_v57  ;;  %1090 = vmatpush.msrb.mxu0 %v2500_v16 }
  0x9d   : > { %1072 = vmatpush.msrb.mxu3 %v2406_v59  ;;  %1091 = vmatpush.msrb.mxu0 %v2521_v20 }
  0x9f   : > { %1073 = vmatpush.msrb.mxu3 %v2410_v60  ;;  %1092 = vmatpush.msrb.mxu0 %v2536_v23 }
  0xa1   : > { %1074 = vmatpush.msrb.mxu3 %v2423_v63  ;;  %1093 = vmatpush.msrb.mxu0 %v2555_v28 }
  0xa3   : > { %1075 = vmatpush.msrb.mxu3 %v2432_v1  ;;  %1094 = vmatpush.msrb.mxu0 %v2564_v31 }
  0xa5   : > { %1076 = vmatpush.msrb.mxu3 %v2443_v4  ;;  %1095 = vmatpush.msrb.mxu0 %v2577_v35 }
  0xa7   : > { %1077 = vmatpush.msrb.mxu3 %v2451_v6  ;;  %1096 = vmatpush.msrb.mxu0 %v2587_v38 }
  0xa9   : > { %1078 = vmatpush.msrb.mxu3 %v2464_v9  ;;  %1097 = vmatpush.msrb.mxu0 %v2595_v40  ;;  %v2797_v9 = vld [vmem:[%s2734_s13] ss:$0 sm:$0xff] }
  0xab   : > { %1098 = vmatpush.msrb.mxu0 %v2604_v43 }
  0xb9   : > { %v506_v51 = vpop.f32.mrf.mxu0  ;;  %v547_v54 = vpop.f32.mrf.mxu1 }
  0xba   : > { %v507_v52 = vadd.f32 %v506_v51, %v2759_v48  ;;  %v548_v55 = vadd.f32 %v547_v54, %v2761_v50 }
  0xbc   : > { %612 = vst [vmem:[#allocation3] sm:$0xff] %v507_v52 }
  0xbd   : > { %613 = vst [vmem:[#allocation3 + $0x8] sm:$0xff] %v548_v55 }
  0xbe   : > { %v588_v62 = vpop.f32.mrf.mxu2 }
  0xbf   : > { %v589_v8 = vadd.f32 %v588_v62, %v2765_v56 }
  0xc1   : > { %614 = vst [vmem:[#allocation3 + $0x10] sm:$0xff] %v589_v8  ;;  %v509_v15 = vpop.f32.mrf.mxu0  ;;  %v550_v32 = vpop.f32.mrf.mxu1 }
  0xc2   : > { %v510_v22 = vadd.f32 %v509_v15, %v2759_v48  ;;  %v551_v44 = vadd.f32 %v550_v32, %v2761_v50 }
  0xc4   : > { %615 = vst [vmem:[#allocation3 + $0x18] sm:$0xff] %v510_v22 }
  0xc5   : > { %616 = vst [vmem:[#allocation3 + $0x20] sm:$0xff] %v551_v44 }
  0xc6   : > { %v591_v46 = vpop.f32.mrf.mxu2 }
  0xc7   : > { %v592_v51 = vadd.f32 %v591_v46, %v2765_v56 }
  0xc9   : > { %617 = vst [vmem:[#allocation3 + $0x28] sm:$0xff] %v592_v51  ;;  %v512_v47 = vpop.f32.mrf.mxu0  ;;  %v553_v54 = vpop.f32.mrf.mxu1 }
  0xca   : > { %v513_v52 = vadd.f32 %v512_v47, %v2759_v48  ;;  %v554_v55 = vadd.f32 %v553_v54, %v2761_v50 }
  0xcc   : > { %618 = vst [vmem:[#allocation3 + $0x30] sm:$0xff] %v513_v52 }
  0xcd   : > { %619 = vst [vmem:[#allocation3 + $0x38] sm:$0xff] %v554_v55 }
  0xce   : > { %v594_v62 = vpop.f32.mrf.mxu2 }
  0xcf   : > { %v595_v8 = vadd.f32 %v594_v62, %v2765_v56 }
  0xd1   : > { %620 = vst [vmem:[#allocation3 + $0x40] sm:$0xff] %v595_v8  ;;  %v515_v15 = vpop.f32.mrf.mxu0  ;;  %v556_v32 = vpop.f32.mrf.mxu1 }
  0xd2   : > { %v516_v22 = vadd.f32 %v515_v15, %v2759_v48  ;;  %v557_v44 = vadd.f32 %v556_v32, %v2761_v50 }
  0xd4   : > { %621 = vst [vmem:[#allocation3 + $0x48] sm:$0xff] %v516_v22 }
  0xd5   : > { %622 = vst [vmem:[#allocation3 + $0x50] sm:$0xff] %v557_v44 }
  0xd6   : > { %v597_v46 = vpop.f32.mrf.mxu2 }
  0xd7   : > { %v598_v51 = vadd.f32 %v597_v46, %v2765_v56 }
  0xd9   : > { %623 = vst [vmem:[#allocation3 + $0x58] sm:$0xff] %v598_v51  ;;  %v518_v47 = vpop.f32.mrf.mxu0  ;;  %v559_v54 = vpop.f32.mrf.mxu1 }
  0xda   : > { %v519_v52 = vadd.f32 %v518_v47, %v2759_v48  ;;  %v560_v55 = vadd.f32 %v559_v54, %v2761_v50 }
  0xdc   : > { %624 = vst [vmem:[#allocation3 + $0x60] sm:$0xff] %v519_v52 }
  0xdd   : > { %625 = vst [vmem:[#allocation3 + $0x68] sm:$0xff] %v560_v55 }
  0xde   : > { %v600_v62 = vpop.f32.mrf.mxu2 }
  0xdf   : > { %v601_v8 = vadd.f32 %v600_v62, %v2765_v56 }
  0xe1   : > { %626 = vst [vmem:[#allocation3 + $0x70] sm:$0xff] %v601_v8  ;;  %v521_v15 = vpop.f32.mrf.mxu0  ;;  %v562_v32 = vpop.f32.mrf.mxu1 }
  0xe2   : > { %v522_v22 = vadd.f32 %v521_v15, %v2759_v48  ;;  %v563_v44 = vadd.f32 %v562_v32, %v2761_v50 }
  0xe4   : > { %627 = vst [vmem:[#allocation3 + $0x78] sm:$0xff] %v522_v22 }
  0xe5   : > { %628 = vst [vmem:[#allocation3 + $0x80] sm:$0xff] %v563_v44 }
  0xe6   : > { %v603_v46 = vpop.f32.mrf.mxu2 }
  0xe7   : > { %v604_v51 = vadd.f32 %v603_v46, %v2765_v56  ;;  %v715_v46 = vpop.f32.mrf.mxu3 }
  0xe9   : > { %629 = vst [vmem:[#allocation3 + $0x88] sm:$0xff] %v604_v51  ;;  %v524_v47 = vpop.f32.mrf.mxu0  ;;  %v565_v54 = vpop.f32.mrf.mxu1 }
  0xea   : > { %v525_v52 = vadd.f32 %v524_v47, %v2759_v48  ;;  %v566_v55 = vadd.f32 %v565_v54, %v2761_v50 }
  0xec   : > { %630 = vst [vmem:[#allocation3 + $0x90] sm:$0xff] %v525_v52 }
  0xed   : > { %631 = vst [vmem:[#allocation3 + $0x98] sm:$0xff] %v566_v55 }
  0xee   : > { %v606_v62 = vpop.f32.mrf.mxu2 }
  0xef   : > { %v607_v8 = vadd.f32 %v606_v62, %v2765_v56  ;;  %v735_v52 = vpop.f32.mrf.mxu3 }
  0xf1   : > { %632 = vst [vmem:[#allocation3 + $0xa0] sm:$0xff] %v607_v8  ;;  %v527_v15 = vpop.f32.mrf.mxu0  ;;  %v568_v32 = vpop.f32.mrf.mxu1 }
  0xf2   : > { %v528_v22 = vadd.f32 %v527_v15, %v2759_v48  ;;  %v569_v44 = vadd.f32 %v568_v32, %v2761_v50 }
  0xf4   : > { %633 = vst [vmem:[#allocation3 + $0xa8] sm:$0xff] %v528_v22 }
  0xf5   : > { %634 = vst [vmem:[#allocation3 + $0xb0] sm:$0xff] %v569_v44 }
  0xf6   : > { %v609_v51 = vpop.f32.mrf.mxu2 }
  0xf7   : > { %v610_v47 = vadd.f32 %v609_v51, %v2765_v56 }
  0xf9   : > { %635 = vst [vmem:[#allocation3 + $0xb8] sm:$0xff] %v610_v47 }
 0x100   : > { %v695_v48 = vld [vmem:[%s2792_s29] sm:$0xff]  ;;  %v696_v54 = vld [vmem:[%s2792_s29 + $0x8] sm:$0xff]  ;;  %v697_v39 = vld [vmem:[%s2792_s29 + $0x10] sm:$0xff] }
 0x101   : > { %v758_v55 = vadd.f32 %v715_v46, %v695_v48  ;;  %v778_v50 = vadd.f32 %v735_v52, %v696_v54  ;;  %v755_v48 = vpop.f32.mrf.mxu0 }
 0x103   : > { %v1956_v62 = vmul.f32 -1.442695, %v758_v55  ;;  %v1957_v8 = vmul.f32 -1.442695, %v778_v50 }
 0x105   : > { %2045 = vpow2.f32 %v1956_v62 }
 0x106   : > { %2047 = vpow2.f32 %v1957_v8  ;;  %v798_v8 = vadd.f32 %v2797_v9, %v755_v48 }
 0x10b   : > { %v2046_v15 = vpop.eup %2045 }
 0x10c   : > { %v2048_v22 = vpop.eup %2047  ;;  %v762_v32 = vadd.f32 1.0, %v2046_v15 }
 0x10d   : > { %v782_v56 = vadd.f32 1.0, %v2048_v22 }
 0x10e   : > { %2049 = vrcp.f32 %v762_v32  ;;  %v774_v52 = vand.u32 2147483648, %v762_v32  ;;  %v772_v55 = vand.u32 2147483647, %v762_v32  ;;  %vm768_vm1 = vweird.f32 %v762_v32 }
 0x10f   : > { %2051 = vrcp.f32 %v782_v56  ;;  %vm788_vm5 = vweird.f32 %v782_v56 }
 0x110   : > { %v775_v15 = vor.u32 1.1754944e-38, %v774_v52  ;;  %vm773_vm3 = vcmp.eq.f32.partialorder %v772_v55, 8.507059e+37 }
 0x114   : > { %v2050_v44 = vpop.eup %2049 }
 0x115   : > { %v2052_v51 = vpop.eup %2051  ;;  %v764_v47 = vmul.f32 %v2050_v44, %v762_v32  ;;  %vm769_vm0 = vweird.f32 %v2050_v44 }
 0x116   : > { %v784_v43 = vmul.f32 %v2052_v51, %v782_v56  ;;  %vm770_vm2 = vmor %vm768_vm1, %vm769_vm0  ;;  %vm789_vm4 = vweird.f32 %v2052_v51 }
 0x117   : > { %v765_v42 = vsub.f32 1.0, %v764_v47  ;;  %vm790_vm6 = vmor %vm788_vm5, %vm789_vm4 }
 0x118   : > { %v785_v46 = vsub.f32 1.0, %v784_v43  ;;  %v794_v43 = vand.u32 2147483648, %v782_v56 }
 0x119   : > { %v766_v54 = vmul.f32 %v2050_v44, %v765_v42  ;;  %v792_v42 = vand.u32 2147483647, %v782_v56 }
 0x11a   : > { %v786_v50 = vmul.f32 %v2052_v51, %v785_v46  ;;  %v795_v32 = vor.u32 1.1754944e-38, %v794_v43 }
 0x11b   : > { %v767_v62 = vadd.f32 %v2050_v44, %v766_v54  ;;  %vm793_vm7 = vcmp.eq.f32.partialorder %v792_v42, 8.507059e+37 }
 0x11c   : > { %v787_v40 = vadd.f32 %v2052_v51, %v786_v50 }
 0x11d   : > { %v771_v22 = vsel %vm770_vm2, %v2050_v44, %v767_v62 }
 0x11e   : > { %v776_v47 = vsel %vm773_vm3, %v775_v15, %v771_v22  ;;  %v791_v54 = vsel %vm790_vm6, %v2052_v51, %v787_v40 }
 0x11f   : > { %v799_v6 = vmul.f32 %v798_v8, %v776_v47  ;;  %v796_v48 = vsel %vm793_vm7, %v795_v32, %v791_v54 }
 0x120   : > { %v802_v44 = vsub.f32 1.0, %v796_v48  ;;  %v804_v50 = vmul.f32 %v796_v48, %v2515_v18 }
 0x121   : > { %v800_v46 = vadd.f32 %v799_v6, %v697_v39 }
 0x123   : > { %2053 = vtanh.f32 %v800_v46 }
 0x129   : > { %v2054_v52 = vpop.eup %2053 }
 0x12a   : > { %v803_v55 = vmul.f32 %v2054_v52, %v802_v44 }
 0x12c   : > { %v2808_v56 = vadd.f32 %v804_v50, %v803_v55 }
 0x12e   : > { %807 = vst [vmem:[%s806_s1] sm:$0xff] %v2808_v56  ;;  %837 = vmatmul.f32.vlgmr.msrb.gmra.mxu1 %v2808_v56  ;;  %857 = vmatmul.f32.vlgmr.msrb.gmra.mxu2 %v2808_v56  ;;  %s2864_s1 = sshll.u32 %s811_s0, 3  ;;  %s1996_s0 = smul.u32 24, %s934_s22 }
 0x12f   : > { %877 = vmatmul.f32.vlgmr.msra.gmra.mxu3 %v2808_v56  ;;  %1103 = vmatpush.msrb.mxu1 %v2403_v58  ;;  %s813_s24 = sshra.s32 %s2864_s1, 3  ;;  %s929_s15 = scalar_lea.vmem %s2803_s10, %s2864_s1 [#allocation4] }
 0x130   : > { %1184 = vmatpush.msrb.mxu2 %v2344_v27  ;;  %1204 = vmatpush.msra.mxu3 %v2413_v61  ;;  %v3357_v27 = vld [vmem:[#allocation7_spill] sm:$0xff]  ;;  %s1995_s29 = smul.u32 24, %s813_s24  ;;  %s2987_s1 = scalar_lea.vmem [#allocation3], %s1996_s0 }
 0x131   : > { %1104 = vmatpush.msrb.mxu1 %v2440_v3  ;;  %s1050_s24 = scalar_lea.vmem %s2803_s10, %s1964_s16 [#allocation4]  ;;  %s1176_s16 = sshra.s32 %s1973_s21, 3 }
 0x132   : > { %1185 = vmatpush.msrb.mxu2 %v2348_v29  ;;  %1205 = vmatpush.msra.mxu3 %v2426_v0  ;;  %v3358_v29 = vld [vmem:[#allocation5_spill] sm:$0xff]  ;;  %s2867_s17 = scalar_lea.vmem [#allocation3], %s1995_s29  ;;  %s1055_s29 = sshra.s32 %s1968_s20, 3 }
 0x133   : > { %1105 = vmatpush.msrb.mxu1 %v2448_v5  ;;  %s1998_s22 = smul.u32 24, %s1176_s16  ;;  %s1985_s16 = sshll.u32 %s2710_s18, 3 }
 0x134   : > { %1186 = vmatpush.msrb.mxu2 %v2355_v33  ;;  %1206 = vmatpush.msra.mxu3 %v2437_v2  ;;  %v3359_v33 = vld [vmem:[#allocation8_spill] sm:$0xff] }
 0x135   : > { %1106 = vmatpush.msrb.mxu1 %v2476_v11  ;;  %s3211_s0 = scalar_lea.vmem [#allocation3], %s1998_s22  ;;  %s1539_s22 = sshra.s32 %s1985_s16, 3 }
 0x136   : > { %1187 = vmatpush.msrb.mxu2 %v2362_v37  ;;  %1207 = vmatpush.msra.mxu3 %v2455_v7  ;;  %v3360_v37 = vld [vmem:[#allocation9_spill] sm:$0xff] }
 0x137   : > { %1107 = vmatpush.msrb.mxu1 %v2480_v12 }
 0x138   : > { %1188 = vmatpush.msrb.mxu2 %v2369_v41  ;;  %1208 = vmatpush.msra.mxu3 %v2467_v10  ;;  %v3361_v41 = vld [vmem:[#allocation6_spill] sm:$0xff] }
 0x139   : > { %1108 = vmatpush.msrb.mxu1 %v2511_v17 }
 0x13a   : > { %1189 = vmatpush.msrb.mxu2 %v2376_v45  ;;  %1209 = vmatpush.msra.mxu3 %v2483_v13  ;;  %v3362_v45 = vld [vmem:[#allocation10_spill] sm:$0xff] }
 0x13b   : > { %1109 = vmatpush.msrb.mxu1 %v2518_v19 }
 0x13c   : > { %1190 = vmatpush.msrb.mxu2 %v2383_v49  ;;  %1210 = vmatpush.msra.mxu3 %v2490_v14  ;;  %v818_v49 = vld [vmem:[%s2867_s17] sm:$0xff] }
 0x13d   : > { %1110 = vmatpush.msrb.mxu1 %v2526_v21 }
 0x13e   : > { %1191 = vmatpush.msrb.mxu2 %v2390_v53  ;;  %1211 = vmatpush.msra.mxu3 %v2500_v16 }
 0x13f   : > { %1111 = vmatpush.msrb.mxu1 %v2539_v24 }
 0x140   : > { %1192 = vmatpush.msrb.mxu2 %v2400_v57  ;;  %1212 = vmatpush.msra.mxu3 %v2521_v20 }
 0x141   : > { %1112 = vmatpush.msrb.mxu1 %v2546_v25 }
 0x142   : > { %1193 = vmatpush.msrb.mxu2 %v2406_v59  ;;  %1213 = vmatpush.msra.mxu3 %v2536_v23  ;;  %v819_v59 = vld [vmem:[%s2867_s17 + $0x8] sm:$0xff] }
 0x143   : > { %1113 = vmatpush.msrb.mxu1 %v2552_v26 }
 0x144   : > { %1194 = vmatpush.msrb.mxu2 %v2410_v60  ;;  %1214 = vmatpush.msra.mxu3 %v2555_v28 }
 0x145   : > { %1114 = vmatpush.msrb.mxu1 %v2560_v30 }
 0x146   : > { %1195 = vmatpush.msrb.mxu2 %v2423_v63  ;;  %1215 = vmatpush.msra.mxu3 %v2564_v31 }
 0x147   : > { %1115 = vmatpush.msrb.mxu1 %v2573_v34 }
 0x148   : > { %1196 = vmatpush.msrb.mxu2 %v2432_v1  ;;  %1216 = vmatpush.msra.mxu3 %v2577_v35 }
 0x149   : > { %1116 = vmatpush.msrb.mxu1 %v2583_v36 }
 0x14a   : > { %1197 = vmatpush.msrb.mxu2 %v2443_v4  ;;  %1217 = vmatpush.msra.mxu3 %v2587_v38 }
 0x14b   : > { %1117 = vmatpush.msrb.mxu1 %v3357_v27 }
 0x14c   : > { %1198 = vmatpush.msrb.mxu2 %v3358_v29  ;;  %1218 = vmatpush.msra.mxu3 %v3359_v33 }
 0x14d   : > { %1118 = vmatpush.msrb.mxu1 %v3360_v37 }
 0x14e   : > { %1199 = vmatpush.msrb.mxu2 %v3361_v41  ;;  %1219 = vmatpush.msra.mxu3 %v3362_v45  ;;  %v820_v41 = vld [vmem:[%s2867_s17 + $0x10] sm:$0xff]  ;;  %s1997_s17 = smul.u32 24, %s1055_s29 }
 0x1ab   : > { %v838_v53 = vpop.f32.mrf.mxu1 }
 0x1ac   : > { %v881_v57 = vadd.f32 %v838_v53, %v818_v49 }
 0x1ae   : > { %v1961_v58 = vmul.f32 -1.442695, %v881_v57 }
 0x1b0   : > { %2055 = vpow2.f32 %v1961_v58 }
 0x1b1   : > { %v858_v60 = vpop.f32.mrf.mxu2 }
 0x1b2   : > { %v901_v61 = vadd.f32 %v858_v60, %v819_v59  ;;  %v878_v47 = vpop.f32.mrf.mxu3 }
 0x1b3   : > { %v921_v48 = vadd.f32 %v2797_v9, %v878_v47 }
 0x1b4   : > { %v1962_v63 = vmul.f32 -1.442695, %v901_v61 }
 0x1b6   : > { %v2056_v1 = vpop.eup %2055  ;;  %2057 = vpow2.f32 %v1962_v63 }
 0x1b7   : > { %v885_v4 = vadd.f32 1.0, %v2056_v1 }
 0x1b9   : > { %2059 = vrcp.f32 %v885_v4  ;;  %v897_v62 = vand.u32 2147483648, %v885_v4  ;;  %v895_v15 = vand.u32 2147483647, %v885_v4  ;;  %vm891_vm9 = vweird.f32 %v885_v4 }
 0x1bb   : > { %v898_v46 = vor.u32 1.1754944e-38, %v897_v62  ;;  %vm896_vm11 = vcmp.eq.f32.partialorder %v895_v15, 8.507059e+37 }
 0x1bc   : > { %v2058_v6 = vpop.eup %2057 }
 0x1bd   : > { %v905_v18 = vadd.f32 1.0, %v2058_v6  ;;  %v2883_v6 = vld [vmem:[%s2335_s19 + $0x178] sm:$0xff] }
 0x1bf   : > { %v2060_v39 = vpop.eup %2059  ;;  %2061 = vrcp.f32 %v905_v18  ;;  %v917_v55 = vand.u32 2147483648, %v905_v18  ;;  %v915_v29 = vand.u32 2147483647, %v905_v18  ;;  %vm911_vm13 = vweird.f32 %v905_v18 }
 0x1c0   : > { %v887_v40 = vmul.f32 %v2060_v39, %v885_v4  ;;  %vm892_vm8 = vweird.f32 %v2060_v39 }
 0x1c1   : > { %vm893_vm10 = vmor %vm891_vm9, %vm892_vm8  ;;  %v918_v57 = vor.u32 1.1754944e-38, %v917_v55  ;;  %vm916_vm15 = vcmp.eq.f32.partialorder %v915_v29, 8.507059e+37 }
 0x1c2   : > { %v888_v51 = vsub.f32 1.0, %v887_v40  ;;  %v2902_v40 = vld [vmem:[%s2335_s19 + $0x138] sm:$0xff] }
 0x1c4   : > { %v889_v8 = vmul.f32 %v2060_v39, %v888_v51  ;;  %v2908_v51 = vld [vmem:[%s2335_s19 + $0x120] sm:$0xff] }
 0x1c5   : > { %v2062_v22 = vpop.eup %2061 }
 0x1c6   : > { %v907_v43 = vmul.f32 %v2062_v22, %v905_v18  ;;  %v890_v42 = vadd.f32 %v2060_v39, %v889_v8  ;;  %vm912_vm12 = vweird.f32 %v2062_v22  ;;  %v2887_v18 = vld [vmem:[%s2335_s19 + $0x168] sm:$0xff] }
 0x1c7   : > { %vm913_vm14 = vmor %vm911_vm13, %vm912_vm12 }
 0x1c8   : > { %v908_v54 = vsub.f32 1.0, %v907_v43  ;;  %v894_v32 = vsel %vm893_vm10, %v2060_v39, %v890_v42  ;;  %v2896_v39 = vld [vmem:[%s2335_s19 + $0x150] sm:$0xff] }
 0x1c9   : > { %v899_v44 = vsel %vm896_vm11, %v898_v46, %v894_v32 }
 0x1ca   : > { %v909_v52 = vmul.f32 %v2062_v22, %v908_v54  ;;  %v922_v50 = vmul.f32 %v921_v48, %v899_v44 }
 0x1cc   : > { %v910_v49 = vadd.f32 %v2062_v22, %v909_v52  ;;  %v923_v53 = vadd.f32 %v922_v50, %v820_v41  ;;  %v941_v50 = vld [vmem:[%s2987_s1 + $0x10] sm:$0xff] }
 0x1ce   : > { %v914_v58 = vsel %vm913_vm14, %v2062_v22, %v910_v49  ;;  %2063 = vtanh.f32 %v923_v53 }
 0x1cf   : > { %v919_v59 = vsel %vm916_vm15, %v918_v57, %v914_v58 }
 0x1d0   : > { %v925_v60 = vsub.f32 1.0, %v919_v59  ;;  %v927_v1 = vmul.f32 %v919_v59, %v2808_v56  ;;  %v2891_v56 = vld [vmem:[%s2335_s19 + $0x170] sm:$0xff] }
 0x1d4   : > { %v2064_v61 = vpop.eup %2063 }
 0x1d5   : > { %v926_v63 = vmul.f32 %v2064_v61, %v925_v60 }
 0x1d7   : > { %v2876_v4 = vadd.f32 %v927_v1, %v926_v63  ;;  %v3007_v63 = vld [vmem:[%s2335_s19 + $0x160] sm:$0xff]  ;;  %v3012_v1 = vld [vmem:[%s2335_s19 + $0x158] sm:$0xff] }
 0x1d9   : > { %930 = vst [vmem:[%s929_s15] sm:$0xff] %v2876_v4  ;;  %958 = vmatmul.f32.vlgmr.msra.gmra.mxu0 %v2876_v4  ;;  %978 = vmatmul.f32.vlgmr.msra.gmra.mxu1 %v2876_v4  ;;  %s3144_s15 = scalar_lea.vmem [#allocation3], %s1997_s17  ;;  %s1981_s17 = sshll.u32 %s2701_s14, 3 }
 0x1da   : > { %998 = vmatmul.f32.vlgmr.msra.gmra.mxu2 %v2876_v4  ;;  %1224 = vmatpush.msra.mxu0 %v2883_v6  ;;  %s1534_s8 = scalar_lea.vmem %s2803_s10, %s1981_s17 [#allocation4]  ;;  %s1655_s14 = scalar_lea.vmem %s2803_s10, %s1985_s16 [#allocation4] }
 0x1db   : > { %1305 = vmatpush.msra.mxu1 %v2887_v18  ;;  %1325 = vmatpush.msra.mxu2 %v2891_v56 }
 0x1dc   : > { %1225 = vmatpush.msra.mxu0 %v2440_v3  ;;  %v2926_v3 = vld [vmem:[%s2335_s19 + $0xd8] sm:$0xff] }
 0x1dd   : > { %1306 = vmatpush.msra.mxu1 %v2896_v39  ;;  %1326 = vmatpush.msra.mxu2 %v2426_v0  ;;  %v2914_v0 = vld [vmem:[%s2335_s19 + $0x108] sm:$0xff] }
 0x1de   : > { %1226 = vmatpush.msra.mxu0 %v2448_v5  ;;  %v2932_v5 = vld [vmem:[%s2335_s19 + $0xc0] sm:$0xff] }
 0x1df   : > { %1307 = vmatpush.msra.mxu1 %v2902_v40  ;;  %1327 = vmatpush.msra.mxu2 %v2437_v2  ;;  %v2920_v2 = vld [vmem:[%s2335_s19 + $0xf0] sm:$0xff] }
 0x1e0   : > { %1227 = vmatpush.msra.mxu0 %v2476_v11  ;;  %v2950_v11 = vld [vmem:[%s2335_s19 + $0x78] sm:$0xff] }
 0x1e1   : > { %1308 = vmatpush.msra.mxu1 %v2908_v51  ;;  %1328 = vmatpush.msra.mxu2 %v2455_v7  ;;  %v2938_v7 = vld [vmem:[%s2335_s19 + $0xa8] sm:$0xff] }
 0x1e2   : > { %1228 = vmatpush.msra.mxu0 %v2480_v12  ;;  %v2956_v12 = vld [vmem:[%s2335_s19 + $0x60] sm:$0xff] }
 0x1e3   : > { %1309 = vmatpush.msra.mxu1 %v2914_v0  ;;  %1329 = vmatpush.msra.mxu2 %v2467_v10  ;;  %v2944_v10 = vld [vmem:[%s2335_s19 + $0x90] sm:$0xff] }
 0x1e4   : > { %1229 = vmatpush.msra.mxu0 %v2511_v17  ;;  %v2980_v17 = vld [vmem:[%s2335_s19] sm:$0xff] }
 0x1e5   : > { %1310 = vmatpush.msra.mxu1 %v2920_v2  ;;  %1330 = vmatpush.msra.mxu2 %v2483_v13  ;;  %v2962_v13 = vld [vmem:[%s2335_s19 + $0x48] sm:$0xff]  ;;  %3364 = vst [vmem:[#allocation5_spill] sm:$0xff] %v2980_v17 }
 0x1e6   : > { %1230 = vmatpush.msra.mxu0 %v2518_v19  ;;  %v939_v19 = vld [vmem:[%s2987_s1] sm:$0xff] }
 0x1e7   : > { %1311 = vmatpush.msra.mxu1 %v2926_v3  ;;  %1331 = vmatpush.msra.mxu2 %v2490_v14  ;;  %v2968_v14 = vld [vmem:[%s2335_s19 + $0x30] sm:$0xff] }
 0x1e8   : > { %1231 = vmatpush.msra.mxu0 %v2526_v21  ;;  %v940_v21 = vld [vmem:[%s2987_s1 + $0x8] sm:$0xff]  ;;  %s1292_s1 = scalar_lea.vmem %s2803_s10, %s1973_s21 [#allocation4] }
 0x1e9   : > { %1312 = vmatpush.msra.mxu1 %v2932_v5  ;;  %1332 = vmatpush.msra.mxu2 %v2500_v16  ;;  %v2974_v16 = vld [vmem:[%s2335_s19 + $0x18] sm:$0xff] }
 0x1ea   : > { %1232 = vmatpush.msra.mxu0 %v2539_v24  ;;  %3363 = vst [vmem:[#allocation7_spill] sm:$0xff] %v2974_v16 }
 0x1eb   : > { %1313 = vmatpush.msra.mxu1 %v2938_v7  ;;  %1333 = vmatpush.msra.mxu2 %v2521_v20 }
 0x1ec   : > { %1233 = vmatpush.msra.mxu0 %v2546_v25 }
 0x1ed   : > { %1314 = vmatpush.msra.mxu1 %v2944_v10  ;;  %1334 = vmatpush.msra.mxu2 %v2536_v23 }
 0x1ee   : > { %1234 = vmatpush.msra.mxu0 %v2552_v26 }
 0x1ef   : > { %1315 = vmatpush.msra.mxu1 %v2950_v11  ;;  %1335 = vmatpush.msra.mxu2 %v2555_v28 }
 0x1f0   : > { %1235 = vmatpush.msra.mxu0 %v2560_v30 }
 0x1f1   : > { %1316 = vmatpush.msra.mxu1 %v2956_v12  ;;  %1336 = vmatpush.msra.mxu2 %v2564_v31 }
 0x1f2   : > { %1236 = vmatpush.msra.mxu0 %v2573_v34 }
 0x1f3   : > { %1317 = vmatpush.msra.mxu1 %v2962_v13  ;;  %1337 = vmatpush.msra.mxu2 %v2577_v35 }
 0x1f4   : > { %1237 = vmatpush.msra.mxu0 %v2583_v36 }
 0x1f5   : > { %1318 = vmatpush.msra.mxu1 %v2968_v14  ;;  %1338 = vmatpush.msra.mxu2 %v2587_v38 }
 0x1f6   : > { %1238 = vmatpush.msra.mxu0 %v3357_v27 }
 0x1f7   : > { %1319 = vmatpush.msra.mxu1 %v2974_v16  ;;  %1339 = vmatpush.msra.mxu2 %v3359_v33 }
 0x1f8   : > { %1239 = vmatpush.msra.mxu0 %v3360_v37 }
 0x1f9   : > { %1320 = vmatpush.msra.mxu1 %v2980_v17  ;;  %1340 = vmatpush.msra.mxu2 %v3362_v45 }
 0x256   : > { %v959_v20 = vpop.f32.mrf.mxu0  ;;  %v979_v23 = vpop.f32.mrf.mxu1 }
 0x257   : > { %v1002_v24 = vadd.f32 %v959_v20, %v939_v19  ;;  %v1022_v25 = vadd.f32 %v979_v23, %v940_v21  ;;  %v3021_v19 = vld [vmem:[%s2335_s19 + $0x140] sm:$0xff]  ;;  %v3025_v20 = vld [vmem:[%s2335_s19 + $0x130] sm:$0xff]  ;;  %v3030_v21 = vld [vmem:[%s2335_s19 + $0x128] sm:$0xff] }
 0x258   : > { %v3034_v23 = vld [vmem:[%s2335_s19 + $0x118] sm:$0xff] }
 0x259   : > { %v1966_v26 = vmul.f32 -1.442695, %v1002_v24  ;;  %v1967_v28 = vmul.f32 -1.442695, %v1022_v25  ;;  %v3039_v24 = vld [vmem:[%s2335_s19 + $0x110] sm:$0xff]  ;;  %v3043_v25 = vld [vmem:[%s2335_s19 + $0x100] sm:$0xff] }
 0x25b   : > { %2065 = vpow2.f32 %v1966_v26  ;;  %v3048_v26 = vld [vmem:[%s2335_s19 + $0xf8] sm:$0xff] }
 0x25c   : > { %2067 = vpow2.f32 %v1967_v28  ;;  %v3052_v28 = vld [vmem:[%s2335_s19 + $0xe8] sm:$0xff] }
 0x25d   : > { %v999_v47 = vpop.f32.mrf.mxu2 }
 0x25e   : > { %v1042_v54 = vadd.f32 %v2797_v9, %v999_v47  ;;  %v3120_v47 = vld [vmem:[%s2335_s19 + $0x38] sm:$0xff] }
 0x261   : > { %v2066_v30 = vpop.eup %2065 }
 0x262   : > { %v2068_v31 = vpop.eup %2067  ;;  %v1006_v34 = vadd.f32 1.0, %v2066_v30  ;;  %v3057_v30 = vld [vmem:[%s2335_s19 + $0xe0] sm:$0xff] }
 0x263   : > { %v1026_v35 = vadd.f32 1.0, %v2068_v31  ;;  %v3061_v31 = vld [vmem:[%s2335_s19 + $0xd0] sm:$0xff] }
 0x264   : > { %2069 = vrcp.f32 %v1006_v34  ;;  %v1018_v62 = vand.u32 2147483648, %v1006_v34  ;;  %v1016_v15 = vand.u32 2147483647, %v1006_v34  ;;  %vm1012_vm1 = vweird.f32 %v1006_v34 }
 0x265   : > { %2071 = vrcp.f32 %v1026_v35  ;;  %v1038_v44 = vand.u32 2147483648, %v1026_v35  ;;  %vm1032_vm5 = vweird.f32 %v1026_v35  ;;  %v1036_v55 = vand.u32 2147483647, %v1026_v35 }
 0x266   : > { %v1019_v42 = vor.u32 1.1754944e-38, %v1018_v62  ;;  %vm1017_vm3 = vcmp.eq.f32.partialorder %v1016_v15, 8.507059e+37  ;;  %v3102_v62 = vld [vmem:[%s2335_s19 + $0x68] sm:$0xff]  ;;  %v3111_v15 = vld [vmem:[%s2335_s19 + $0x50] sm:$0xff] }
 0x267   : > { %v1039_v49 = vor.u32 1.1754944e-38, %v1038_v44  ;;  %vm1037_vm7 = vcmp.eq.f32.partialorder %v1036_v55, 8.507059e+37  ;;  %v1060_v55 = vld [vmem:[%s3144_s15] sm:$0xff] }
 0x26a   : > { %v2070_v36 = vpop.eup %2069 }
 0x26b   : > { %v2072_v38 = vpop.eup %2071  ;;  %v1008_v27 = vmul.f32 %v2070_v36, %v1006_v34  ;;  %vm1013_vm0 = vweird.f32 %v2070_v36  ;;  %v3066_v34 = vld [vmem:[%s2335_s19 + $0xc8] sm:$0xff] }
 0x26c   : > { %v1028_v33 = vmul.f32 %v2072_v38, %v1026_v35  ;;  %vm1014_vm2 = vmor %vm1012_vm1, %vm1013_vm0  ;;  %vm1033_vm4 = vweird.f32 %v2072_v38  ;;  %v3070_v35 = vld [vmem:[%s2335_s19 + $0xb8] sm:$0xff] }
 0x26d   : > { %v1009_v37 = vsub.f32 1.0, %v1008_v27  ;;  %vm1034_vm6 = vmor %vm1032_vm5, %vm1033_vm4  ;;  %v3084_v27 = vld [vmem:[%s2335_s19 + $0x98] sm:$0xff] }
 0x26e   : > { %v1029_v45 = vsub.f32 1.0, %v1028_v33  ;;  %v3088_v33 = vld [vmem:[%s2335_s19 + $0x88] sm:$0xff] }
 0x26f   : > { %v1010_v8 = vmul.f32 %v2070_v36, %v1009_v37  ;;  %v3093_v37 = vld [vmem:[%s2335_s19 + $0x80] sm:$0xff] }
 0x270   : > { %v1030_v22 = vmul.f32 %v2072_v38, %v1029_v45  ;;  %v3097_v45 = vld [vmem:[%s2335_s19 + $0x70] sm:$0xff] }
 0x271   : > { %v1011_v43 = vadd.f32 %v2070_v36, %v1010_v8  ;;  %v3106_v8 = vld [vmem:[%s2335_s19 + $0x58] sm:$0xff] }
 0x272   : > { %v1031_v32 = vadd.f32 %v2072_v38, %v1030_v22  ;;  %v3115_v22 = vld [vmem:[%s2335_s19 + $0x40] sm:$0xff] }
 0x273   : > { %v1015_v46 = vsel %vm1014_vm2, %v2070_v36, %v1011_v43  ;;  %v3075_v36 = vld [vmem:[%s2335_s19 + $0xb0] sm:$0xff]  ;;  %v3124_v43 = vld [vmem:[%s2335_s19 + $0x28] sm:$0xff] }
 0x274   : > { %v1020_v48 = vsel %vm1017_vm3, %v1019_v42, %v1015_v46  ;;  %v1035_v41 = vsel %vm1034_vm6, %v2072_v38, %v1031_v32  ;;  %v3079_v38 = vld [vmem:[%s2335_s19 + $0xa0] sm:$0xff]  ;;  %3365 = vst [vmem:[#allocation8_spill] sm:$0xff] %v3124_v43  ;;  %v3133_v46 = vld [vmem:[%s2335_s19 + $0x10] sm:$0xff]  ;;  %v1061_v32 = vld [vmem:[%s3144_s15 + $0x8] sm:$0xff] }
 0x275   : > { %v1043_v52 = vmul.f32 %v1042_v54, %v1020_v48  ;;  %v1040_v53 = vsel %vm1037_vm7, %v1039_v49, %v1035_v41  ;;  %v3129_v42 = vld [vmem:[%s2335_s19 + $0x20] sm:$0xff]  ;;  %3367 = vst [vmem:[#allocation6_spill] sm:$0xff] %v3133_v46  ;;  %v3138_v54 = vld [vmem:[%s2335_s19 + $0x8] sm:$0xff] }
 0x276   : > { %v1046_v57 = vsub.f32 1.0, %v1040_v53  ;;  %v1048_v60 = vmul.f32 %v1040_v53, %v2876_v4  ;;  %v3016_v4 = vld [vmem:[%s2335_s19 + $0x148] sm:$0xff]  ;;  %3366 = vst [vmem:[#allocation9_spill] sm:$0xff] %v3129_v42  ;;  %s1171_s19 = scalar_lea.vmem %s2803_s10, %s1968_s20 [#allocation4] }
 0x277   : > { %v1044_v29 = vadd.f32 %v1043_v52, %v941_v50  ;;  %3368 = vst [vmem:[#allocation10_spill] sm:$0xff] %v3138_v54 }
 0x279   : > { %2073 = vtanh.f32 %v1044_v29 }
 0x27f   : > { %v2074_v58 = vpop.eup %2073 }
 0x280   : > { %v1047_v59 = vmul.f32 %v2074_v58, %v1046_v57 }
 0x282   : > { %v2997_v61 = vadd.f32 %v1048_v60, %v1047_v59 }
 0x284   : > { %1051 = vst [vmem:[%s1050_s24] sm:$0xff] %v2997_v61  ;;  %1079 = vmatmul.f32.vlgmr.msrb.gmra.mxu3 %v2997_v61  ;;  %1099 = vmatmul.f32.vlgmr.msrb.gmra.mxu0 %v2997_v61  ;;  %s1297_s24 = sshra.s32 %s1977_s23, 3 }
 0x285   : > { %1119 = vmatmul.f32.vlgmr.msrb.gmra.mxu1 %v2997_v61  ;;  %1345 = vmatpush.msrb.mxu3 %v2883_v6  ;;  %s1999_s20 = smul.u32 24, %s1297_s24 }
 0x286   : > { %1426 = vmatpush.msrb.mxu0 %v2887_v18  ;;  %1446 = vmatpush.msrb.mxu1 %v2891_v56 }
 0x287   : > { %1346 = vmatpush.msrb.mxu3 %v3007_v63  ;;  %s3246_s29 = scalar_lea.vmem [#allocation3], %s1999_s20 }
 0x288   : > { %1427 = vmatpush.msrb.mxu0 %v2896_v39  ;;  %1447 = vmatpush.msrb.mxu1 %v3012_v1 }
 0x289   : > { %1347 = vmatpush.msrb.mxu3 %v3016_v4 }
 0x28a   : > { %1428 = vmatpush.msrb.mxu0 %v2902_v40  ;;  %1448 = vmatpush.msrb.mxu1 %v3021_v19 }
 0x28b   : > { %1348 = vmatpush.msrb.mxu3 %v3025_v20 }
 0x28c   : > { %1429 = vmatpush.msrb.mxu0 %v2908_v51  ;;  %1449 = vmatpush.msrb.mxu1 %v3030_v21 }
 0x28d   : > { %1349 = vmatpush.msrb.mxu3 %v3034_v23 }
 0x28e   : > { %1430 = vmatpush.msrb.mxu0 %v2914_v0  ;;  %1450 = vmatpush.msrb.mxu1 %v3039_v24 }
 0x28f   : > { %1350 = vmatpush.msrb.mxu3 %v3043_v25 }
 0x290   : > { %1431 = vmatpush.msrb.mxu0 %v2920_v2  ;;  %1451 = vmatpush.msrb.mxu1 %v3048_v26 }
 0x291   : > { %1351 = vmatpush.msrb.mxu3 %v3052_v28 }
 0x292   : > { %1432 = vmatpush.msrb.mxu0 %v2926_v3  ;;  %1452 = vmatpush.msrb.mxu1 %v3057_v30 }
 0x293   : > { %1352 = vmatpush.msrb.mxu3 %v3061_v31 }
 0x294   : > { %1433 = vmatpush.msrb.mxu0 %v2932_v5  ;;  %1453 = vmatpush.msrb.mxu1 %v3066_v34 }
 0x295   : > { %1353 = vmatpush.msrb.mxu3 %v3070_v35 }
 0x296   : > { %1434 = vmatpush.msrb.mxu0 %v2938_v7  ;;  %1454 = vmatpush.msrb.mxu1 %v3075_v36 }
 0x297   : > { %1354 = vmatpush.msrb.mxu3 %v3079_v38 }
 0x298   : > { %1435 = vmatpush.msrb.mxu0 %v2944_v10  ;;  %1455 = vmatpush.msrb.mxu1 %v3084_v27 }
 0x299   : > { %1355 = vmatpush.msrb.mxu3 %v3088_v33 }
 0x29a   : > { %1436 = vmatpush.msrb.mxu0 %v2950_v11  ;;  %1456 = vmatpush.msrb.mxu1 %v3093_v37 }
 0x29b   : > { %1356 = vmatpush.msrb.mxu3 %v3097_v45 }
 0x29c   : > { %1437 = vmatpush.msrb.mxu0 %v2956_v12  ;;  %1457 = vmatpush.msrb.mxu1 %v3102_v62 }
 0x29d   : > { %1357 = vmatpush.msrb.mxu3 %v3106_v8 }
 0x29e   : > { %1438 = vmatpush.msrb.mxu0 %v2962_v13  ;;  %1458 = vmatpush.msrb.mxu1 %v3111_v15 }
 0x29f   : > { %1358 = vmatpush.msrb.mxu3 %v3115_v22 }
 0x2a0   : > { %1439 = vmatpush.msrb.mxu0 %v2968_v14  ;;  %1459 = vmatpush.msrb.mxu1 %v3120_v47 }
 0x2a1   : > { %1359 = vmatpush.msrb.mxu3 %v3124_v43 }
 0x2a2   : > { %1440 = vmatpush.msrb.mxu0 %v2974_v16  ;;  %1460 = vmatpush.msrb.mxu1 %v3129_v42 }
 0x2a3   : > { %1360 = vmatpush.msrb.mxu3 %v3133_v46 }
 0x2a4   : > { %1441 = vmatpush.msrb.mxu0 %v2980_v17  ;;  %1461 = vmatpush.msrb.mxu1 %v3138_v54 }
 0x301   : > { %v1100_v48 = vpop.f32.mrf.mxu0 }
 0x302   : > { %v1143_v44 = vadd.f32 %v1100_v48, %v1061_v32 }
 0x304   : > { %v1971_v52 = vmul.f32 -1.442695, %v1143_v44 }
 0x306   : > { %2075 = vpow2.f32 %v1971_v52 }
 0x307   : > { %v1080_v50 = vpop.f32.mrf.mxu3 }
 0x308   : > { %v1123_v29 = vadd.f32 %v1080_v50, %v1060_v55  ;;  %v1120_v55 = vpop.f32.mrf.mxu1 }
 0x30a   : > { %v1970_v41 = vmul.f32 -1.442695, %v1123_v29 }
 0x30c   : > { %v2076_v49 = vpop.eup %2075  ;;  %2077 = vpow2.f32 %v1970_v41  ;;  %v1163_v41 = vadd.f32 %v2797_v9, %v1120_v55 }
 0x30d   : > { %v1147_v53 = vadd.f32 1.0, %v2076_v49 }
 0x30f   : > { %2079 = vrcp.f32 %v1147_v53  ;;  %vm1153_vm13 = vweird.f32 %v1147_v53 }
 0x312   : > { %v2078_v57 = vpop.eup %2077 }
 0x313   : > { %v1127_v58 = vadd.f32 1.0, %v2078_v57 }
 0x315   : > { %2081 = vrcp.f32 %v1127_v58  ;;  %v2080_v59 = vpop.eup %2079  ;;  %v1139_v32 = vand.u32 2147483648, %v1127_v58  ;;  %v1137_v44 = vand.u32 2147483647, %v1127_v58  ;;  %vm1133_vm9 = vweird.f32 %v1127_v58 }
 0x316   : > { %v1149_v60 = vmul.f32 %v2080_v59, %v1147_v53  ;;  %vm1154_vm12 = vweird.f32 %v2080_v59 }
 0x317   : > { %v1140_v29 = vor.u32 1.1754944e-38, %v1139_v32  ;;  %vm1138_vm11 = vcmp.eq.f32.partialorder %v1137_v44, 8.507059e+37  ;;  %vm1155_vm14 = vmor %vm1153_vm13, %vm1154_vm12 }
 0x318   : > { %v1150_v46 = vsub.f32 1.0, %v1149_v60  ;;  %v1159_v60 = vand.u32 2147483648, %v1147_v53 }
 0x31a   : > { %v1151_v52 = vmul.f32 %v2080_v59, %v1150_v46  ;;  %v1062_v46 = vld [vmem:[%s3144_s15 + $0x10] sm:$0xff]  ;;  %s1418_s15 = sshra.s32 %s1981_s17, 3 }
 0x31b   : > { %v2082_v54 = vpop.eup %2081 }
 0x31c   : > { %v1129_v17 = vmul.f32 %v2082_v54, %v1127_v58  ;;  %vm1134_vm8 = vweird.f32 %v2082_v54  ;;  %v1152_v57 = vadd.f32 %v2080_v59, %v1151_v52  ;;  %v1160_v58 = vor.u32 1.1754944e-38, %v1159_v60 }
 0x31d   : > { %vm1135_vm10 = vmor %vm1133_vm9, %vm1134_vm8 }
 0x31e   : > { %v1130_v42 = vsub.f32 1.0, %v1129_v17 }
 0x320   : > { %v1131_v48 = vmul.f32 %v2082_v54, %v1130_v42  ;;  %v1157_v42 = vand.u32 2147483647, %v1147_v53 }
 0x322   : > { %v1132_v50 = vadd.f32 %v2082_v54, %v1131_v48  ;;  %v1156_v48 = vsel %vm1155_vm14, %v2080_v59, %v1152_v57  ;;  %vm1158_vm15 = vcmp.eq.f32.partialorder %v1157_v42, 8.507059e+37 }
 0x323   : > { %v1161_v32 = vsel %vm1158_vm15, %v1160_v58, %v1156_v48 }
 0x324   : > { %v1136_v49 = vsel %vm1135_vm10, %v2082_v54, %v1132_v50  ;;  %v1167_v55 = vsub.f32 1.0, %v1161_v32  ;;  %v1169_v52 = vmul.f32 %v1161_v32, %v2997_v61 }
 0x325   : > { %v1141_v16 = vsel %vm1138_vm11, %v1140_v29, %v1136_v49 }
 0x326   : > { %v1164_v17 = vmul.f32 %v1163_v41, %v1141_v16 }
 0x328   : > { %v1165_v43 = vadd.f32 %v1164_v17, %v1062_v46  ;;  %v1183_v17 = vld [vmem:[%s3211_s0 + $0x10] sm:$0xff] }
 0x32a   : > { %2083 = vtanh.f32 %v1165_v43 }
 0x330   : > { %v2084_v54 = vpop.eup %2083 }
 0x331   : > { %v1168_v44 = vmul.f32 %v2084_v54, %v1167_v55 }
 0x333   : > { %v3154_v50 = vadd.f32 %v1169_v52, %v1168_v44 }
 0x335   : > { %1172 = vst [vmem:[%s1171_s19] sm:$0xff] %v3154_v50  ;;  %1200 = vmatmul.f32.vlgmr.msrb.gmra.mxu2 %v3154_v50  ;;  %1220 = vmatmul.f32.vlgmr.msra.gmra.mxu3 %v3154_v50  ;;  %s2000_s19 = smul.u32 24, %s1418_s15 }
 0x336   : > { %1240 = vmatmul.f32.vlgmr.msra.gmra.mxu0 %v3154_v50  ;;  %1466 = vmatpush.msrb.mxu2 %v2883_v6 }
 0x337   : > { %1547 = vmatpush.msra.mxu3 %v2887_v18  ;;  %1567 = vmatpush.msra.mxu0 %v2891_v56  ;;  %v3369_v18 = vld [vmem:[#allocation8_spill] sm:$0xff]  ;;  %v3370_v56 = vld [vmem:[#allocation7_spill] sm:$0xff]  ;;  %s3262_s21 = scalar_lea.vmem [#allocation3], %s2000_s19 }
 0x338   : > { %1467 = vmatpush.msrb.mxu2 %v3007_v63 }
 0x339   : > { %1548 = vmatpush.msra.mxu3 %v2896_v39  ;;  %1568 = vmatpush.msra.mxu0 %v3012_v1  ;;  %v3371_v39 = vld [vmem:[#allocation9_spill] sm:$0xff] }
 0x33a   : > { %1468 = vmatpush.msrb.mxu2 %v3016_v4 }
 0x33b   : > { %1549 = vmatpush.msra.mxu3 %v2902_v40  ;;  %1569 = vmatpush.msra.mxu0 %v3021_v19  ;;  %v3372_v40 = vld [vmem:[#allocation6_spill] sm:$0xff] }
 0x33c   : > { %1469 = vmatpush.msrb.mxu2 %v3025_v20 }
 0x33d   : > { %1550 = vmatpush.msra.mxu3 %v2908_v51  ;;  %1570 = vmatpush.msra.mxu0 %v3030_v21  ;;  %v3373_v51 = vld [vmem:[#allocation5_spill] sm:$0xff] }
 0x33e   : > { %1470 = vmatpush.msrb.mxu2 %v3034_v23 }
 0x33f   : > { %1551 = vmatpush.msra.mxu3 %v2914_v0  ;;  %1571 = vmatpush.msra.mxu0 %v3039_v24  ;;  %v3374_v0 = vld [vmem:[#allocation10_spill] sm:$0xff] }
 0x340   : > { %1471 = vmatpush.msrb.mxu2 %v3043_v25 }
 0x341   : > { %1552 = vmatpush.msra.mxu3 %v2920_v2  ;;  %1572 = vmatpush.msra.mxu0 %v3048_v26  ;;  %v1181_v2 = vld [vmem:[%s3211_s0] sm:$0xff] }
 0x342   : > { %1472 = vmatpush.msrb.mxu2 %v3052_v28 }
 0x343   : > { %1553 = vmatpush.msra.mxu3 %v2926_v3  ;;  %1573 = vmatpush.msra.mxu0 %v3057_v30 }
 0x344   : > { %1473 = vmatpush.msrb.mxu2 %v3061_v31 }
 0x345   : > { %1554 = vmatpush.msra.mxu3 %v2932_v5  ;;  %1574 = vmatpush.msra.mxu0 %v3066_v34  ;;  %v1182_v5 = vld [vmem:[%s3211_s0 + $0x8] sm:$0xff]  ;;  %s2001_s0 = smul.u32 24, %s1539_s22 }
 0x346   : > { %1474 = vmatpush.msrb.mxu2 %v3070_v35 }
 0x347   : > { %1555 = vmatpush.msra.mxu3 %v2938_v7  ;;  %1575 = vmatpush.msra.mxu0 %v3075_v36 }
 0x348   : > { %1475 = vmatpush.msrb.mxu2 %v3079_v38 }
 0x349   : > { %1556 = vmatpush.msra.mxu3 %v2944_v10  ;;  %1576 = vmatpush.msra.mxu0 %v3084_v27 }
 0x34a   : > { %1476 = vmatpush.msrb.mxu2 %v3088_v33 }
 0x34b   : > { %1557 = vmatpush.msra.mxu3 %v2950_v11  ;;  %1577 = vmatpush.msra.mxu0 %v3093_v37 }
 0x34c   : > { %1477 = vmatpush.msrb.mxu2 %v3097_v45 }
 0x34d   : > { %1558 = vmatpush.msra.mxu3 %v2956_v12  ;;  %1578 = vmatpush.msra.mxu0 %v3102_v62 }
 0x34e   : > { %1478 = vmatpush.msrb.mxu2 %v3106_v8 }
 0x34f   : > { %1559 = vmatpush.msra.mxu3 %v2962_v13  ;;  %1579 = vmatpush.msra.mxu0 %v3111_v15 }
 0x350   : > { %1479 = vmatpush.msrb.mxu2 %v3115_v22 }
 0x351   : > { %1560 = vmatpush.msra.mxu3 %v2968_v14  ;;  %1580 = vmatpush.msra.mxu0 %v3120_v47 }
 0x352   : > { %1480 = vmatpush.msrb.mxu2 %v3369_v18 }
 0x353   : > { %1561 = vmatpush.msra.mxu3 %v3370_v56  ;;  %1581 = vmatpush.msra.mxu0 %v3371_v39 }
 0x354   : > { %1481 = vmatpush.msrb.mxu2 %v3372_v40 }
 0x355   : > { %1562 = vmatpush.msra.mxu3 %v3373_v51  ;;  %1582 = vmatpush.msra.mxu0 %v3374_v0 }
 0x3b3   : > { %v1241_v62 = vpop.f32.mrf.mxu0 }
 0x3b4   : > { %v1284_v53 = vadd.f32 %v2797_v9, %v1241_v62  ;;  %v1423_v62 = vld [vmem:[%s3262_s21] sm:$0xff] }
 0x3b8   : > { %v1201_v3 = vpop.f32.mrf.mxu2  ;;  %v1221_v7 = vpop.f32.mrf.mxu3 }
 0x3b9   : > { %v1244_v10 = vadd.f32 %v1201_v3, %v1181_v2  ;;  %v1264_v11 = vadd.f32 %v1221_v7, %v1182_v5  ;;  %v3251_v7 = vld [vmem:[%s2734_s13] ss:$0 sm:$0xff]  ;;  %s1413_s13 = scalar_lea.vmem %s2803_s10, %s1977_s23 [#allocation4]  ;;  %s3375_s23 = sshll.u32 %s2299_s12, 3 }
 0x3ba   : > { %s1991_s12 = sshll.u32 (%p2286_p3), %s2204_s26, 3 }
 0x3bb   : > { %v1975_v12 = vmul.f32 -1.442695, %v1244_v10  ;;  %v1976_v13 = vmul.f32 -1.442695, %v1264_v11  ;;  %s1680_s17 = scalar_lea.vmem (%p2286_p3), %s3323_s6, %s1991_s12 }
 0x3bd   : > { %2085 = vpow2.f32 %v1975_v12 }
 0x3be   : > { %2087 = vpow2.f32 %v1976_v13 }
 0x3c3   : > { %v2086_v14 = vpop.eup %2085 }
 0x3c4   : > { %v2088_v16 = vpop.eup %2087  ;;  %v1248_v61 = vadd.f32 1.0, %v2086_v14 }
 0x3c5   : > { %v1268_v1 = vadd.f32 1.0, %v2088_v16 }
 0x3c6   : > { %2089 = vrcp.f32 %v1248_v61  ;;  %v1260_v34 = vand.u32 2147483648, %v1248_v61  ;;  %v1258_v37 = vand.u32 2147483647, %v1248_v61  ;;  %vm1254_vm1 = vweird.f32 %v1248_v61 }
 0x3c7   : > { %2091 = vrcp.f32 %v1268_v1  ;;  %v1280_v57 = vand.u32 2147483648, %v1268_v1  ;;  %vm1274_vm5 = vweird.f32 %v1268_v1  ;;  %v1278_v60 = vand.u32 2147483647, %v1268_v1 }
 0x3c8   : > { %v1261_v43 = vor.u32 1.1754944e-38, %v1260_v34  ;;  %vm1259_vm3 = vcmp.eq.f32.partialorder %v1258_v37, 8.507059e+37 }
 0x3c9   : > { %v1281_v48 = vor.u32 1.1754944e-38, %v1280_v57  ;;  %vm1279_vm7 = vcmp.eq.f32.partialorder %v1278_v60, 8.507059e+37 }
 0x3cc   : > { %v2090_v19 = vpop.eup %2089 }
 0x3cd   : > { %v2092_v21 = vpop.eup %2091  ;;  %v1250_v24 = vmul.f32 %v2090_v19, %v1248_v61  ;;  %vm1255_vm0 = vweird.f32 %v2090_v19  ;;  %v1304_v61 = vld [vmem:[%s3246_s29 + $0x10] sm:$0xff] }
 0x3ce   : > { %v1270_v26 = vmul.f32 %v2092_v21, %v1268_v1  ;;  %vm1256_vm2 = vmor %vm1254_vm1, %vm1255_vm0  ;;  %vm1275_vm4 = vweird.f32 %v2092_v21 }
 0x3cf   : > { %v1251_v30 = vsub.f32 1.0, %v1250_v24  ;;  %vm1276_vm6 = vmor %vm1274_vm5, %vm1275_vm4 }
 0x3d0   : > { %v1271_v36 = vsub.f32 1.0, %v1270_v26 }
 0x3d1   : > { %v1252_v27 = vmul.f32 %v2090_v19, %v1251_v30 }
 0x3d2   : > { %v1272_v15 = vmul.f32 %v2092_v21, %v1271_v36 }
 0x3d3   : > { %v1253_v47 = vadd.f32 %v2090_v19, %v1252_v27 }
 0x3d4   : > { %v1273_v41 = vadd.f32 %v2092_v21, %v1272_v15 }
 0x3d5   : > { %v1257_v59 = vsel %vm1256_vm2, %v2090_v19, %v1253_v47  ;;  %v1424_v47 = vld [vmem:[%s3262_s21 + $0x8] sm:$0xff] }
 0x3d6   : > { %v1262_v29 = vsel %vm1259_vm3, %v1261_v43, %v1257_v59  ;;  %v1277_v46 = vsel %vm1276_vm6, %v2092_v21, %v1273_v41 }
 0x3d7   : > { %v1285_v49 = vmul.f32 %v1284_v53, %v1262_v29  ;;  %v1282_v58 = vsel %vm1279_vm7, %v1281_v48, %v1277_v46 }
 0x3d8   : > { %v1288_v9 = vsub.f32 1.0, %v1282_v58  ;;  %v1290_v54 = vmul.f32 %v1282_v58, %v3154_v50 }
 0x3d9   : > { %v1286_v42 = vadd.f32 %v1285_v49, %v1183_v17 }
 0x3db   : > { %2093 = vtanh.f32 %v1286_v42 }
 0x3e1   : > { %v2094_v32 = vpop.eup %2093 }
 0x3e2   : > { %v1289_v55 = vmul.f32 %v2094_v32, %v1288_v9 }
 0x3e4   : > { %v3221_v44 = vadd.f32 %v1290_v54, %v1289_v55 }
 0x3e6   : > { %1293 = vst [vmem:[%s1292_s1] sm:$0xff] %v3221_v44  ;;  %1321 = vmatmul.f32.vlgmr.msra.gmra.mxu1 %v3221_v44  ;;  %1341 = vmatmul.f32.vlgmr.msra.gmra.mxu2 %v3221_v44  ;;  %s3274_s1 = scalar_lea.vmem [#allocation3], %s2001_s0 }
 0x3e7   : > { %1361 = vmatmul.f32.vlgmr.msrb.gmra.mxu3 %v3221_v44  ;;  %1587 = vmatpush.msra.mxu1 %v2883_v6  ;;  %v1302_v6 = vld [vmem:[%s3246_s29] sm:$0xff] }
 0x3e9   : > { %1588 = vmatpush.msra.mxu1 %v3007_v63 }
 0x3eb   : > { %1589 = vmatpush.msra.mxu1 %v3016_v4 }
 0x3ed   : > { %1590 = vmatpush.msra.mxu1 %v3025_v20 }
 0x3ef   : > { %1591 = vmatpush.msra.mxu1 %v3034_v23  ;;  %v1303_v23 = vld [vmem:[%s3246_s29 + $0x8] sm:$0xff]  ;;  %s418_s29 = scalar_lea.vmem %s3324_s7, %s3375_s23 }
 0x3f1   : > { %1592 = vmatpush.msra.mxu1 %v3043_v25 }
 0x3f3   : > { %1593 = vmatpush.msra.mxu1 %v3052_v28 }
 0x3f5   : > { %1594 = vmatpush.msra.mxu1 %v3061_v31 }
 0x3f7   : > { %1595 = vmatpush.msra.mxu1 %v3070_v35 }
 0x3f9   : > { %1596 = vmatpush.msra.mxu1 %v3079_v38 }
 0x3fb   : > { %1597 = vmatpush.msra.mxu1 %v3088_v33 }
 0x3fd   : > { %1598 = vmatpush.msra.mxu1 %v3097_v45 }
 0x3ff   : > { %1599 = vmatpush.msra.mxu1 %v3106_v8 }
 0x401   : > { %1600 = vmatpush.msra.mxu1 %v3115_v22 }
 0x403   : > { %1601 = vmatpush.msra.mxu1 %v3369_v18 }
 0x405   : > { %1602 = vmatpush.msra.mxu1 %v3372_v40 }
 0x463   : > { %v1322_v63 = vpop.f32.mrf.mxu1 }
 0x464   : > { %v1365_v4 = vadd.f32 %v1322_v63, %v1302_v6 }
 0x466   : > { %v1979_v20 = vmul.f32 -1.442695, %v1365_v4 }
 0x468   : > { %2095 = vpow2.f32 %v1979_v20 }
 0x469   : > { %v1342_v25 = vpop.f32.mrf.mxu2 }
 0x46a   : > { %v1385_v28 = vadd.f32 %v1342_v25, %v1303_v23  ;;  %v1362_v40 = vpop.f32.mrf.mxu3 }
 0x46b   : > { %v1405_v10 = vadd.f32 %v3251_v7, %v1362_v40 }
 0x46c   : > { %v1980_v31 = vmul.f32 -1.442695, %v1385_v28 }
 0x46e   : > { %v2096_v35 = vpop.eup %2095  ;;  %2097 = vpow2.f32 %v1980_v31 }
 0x46f   : > { %v1369_v38 = vadd.f32 1.0, %v2096_v35 }
 0x471   : > { %2099 = vrcp.f32 %v1369_v38  ;;  %v1381_v50 = vand.u32 2147483648, %v1369_v38  ;;  %v1379_v56 = vand.u32 2147483647, %v1369_v38  ;;  %vm1375_vm9 = vweird.f32 %v1369_v38 }
 0x473   : > { %v1382_v2 = vor.u32 1.1754944e-38, %v1381_v50  ;;  %vm1380_vm11 = vcmp.eq.f32.partialorder %v1379_v56, 8.507059e+37 }
 0x474   : > { %v2098_v33 = vpop.eup %2097 }
 0x475   : > { %v1389_v45 = vadd.f32 1.0, %v2098_v33 }
 0x477   : > { %v2100_v8 = vpop.eup %2099  ;;  %2101 = vrcp.f32 %v1389_v45  ;;  %v1401_v13 = vand.u32 2147483648, %v1389_v45  ;;  %v1399_v16 = vand.u32 2147483647, %v1389_v45  ;;  %vm1395_vm13 = vweird.f32 %v1389_v45 }
 0x478   : > { %v1371_v22 = vmul.f32 %v2100_v8, %v1369_v38  ;;  %vm1376_vm8 = vweird.f32 %v2100_v8 }
 0x479   : > { %vm1377_vm10 = vmor %vm1375_vm9, %vm1376_vm8  ;;  %v1402_v21 = vor.u32 1.1754944e-38, %v1401_v13  ;;  %vm1400_vm15 = vcmp.eq.f32.partialorder %v1399_v16, 8.507059e+37 }
 0x47a   : > { %v1372_v52 = vsub.f32 1.0, %v1371_v22 }
 0x47c   : > { %v1373_v18 = vmul.f32 %v2100_v8, %v1372_v52 }
 0x47d   : > { %v2102_v39 = vpop.eup %2101 }
 0x47e   : > { %v1391_v51 = vmul.f32 %v2102_v39, %v1389_v45  ;;  %v1374_v0 = vadd.f32 %v2100_v8, %v1373_v18  ;;  %vm1396_vm12 = vweird.f32 %v2102_v39  ;;  %v1425_v45 = vld [vmem:[%s3262_s21 + $0x10] sm:$0xff] }
 0x47f   : > { %vm1397_vm14 = vmor %vm1395_vm13, %vm1396_vm12 }
 0x480   : > { %v1392_v3 = vsub.f32 1.0, %v1391_v51  ;;  %v1378_v5 = vsel %vm1377_vm10, %v2100_v8, %v1374_v0  ;;  %v1545_v0 = vld [vmem:[%s3274_s1 + $0x8] sm:$0xff] }
 0x481   : > { %v1383_v11 = vsel %vm1380_vm11, %v1382_v2, %v1378_v5 }
 0x482   : > { %v1393_v12 = vmul.f32 %v2102_v39, %v1392_v3  ;;  %v1406_v14 = vmul.f32 %v1405_v10, %v1383_v11  ;;  %v1544_v10 = vld [vmem:[%s3274_s1] sm:$0xff] }
 0x484   : > { %v1394_v1 = vadd.f32 %v2102_v39, %v1393_v12  ;;  %v1407_v19 = vadd.f32 %v1406_v14, %v1304_v61 }
 0x486   : > { %v1398_v24 = vsel %vm1397_vm14, %v2102_v39, %v1394_v1  ;;  %2103 = vtanh.f32 %v1407_v19 }
 0x487   : > { %v1403_v26 = vsel %vm1400_vm15, %v1402_v21, %v1398_v24 }
 0x488   : > { %v1409_v30 = vsub.f32 1.0, %v1403_v26  ;;  %v1411_v27 = vmul.f32 %v1403_v26, %v3221_v44 }
 0x48c   : > { %v2104_v34 = vpop.eup %2103 }
 0x48d   : > { %v1410_v36 = vmul.f32 %v2104_v34, %v1409_v30 }
 0x48f   : > { %v1412_v37 = vadd.f32 %v1411_v27, %v1410_v36 }
 0x491   : > { %1414 = vst [vmem:[%s1413_s13] sm:$0xff] %v1412_v37  ;;  %1442 = vmatmul.f32.vlgmr.msrb.gmra.mxu0 %v1412_v37  ;;  %1462 = vmatmul.f32.vlgmr.msrb.gmra.mxu1 %v1412_v37 }
 0x492   : > { %1482 = vmatmul.f32.vlgmr.msrb.gmra.mxu2 %v1412_v37 }
 0x50e   : > { %v1443_v15 = vpop.f32.mrf.mxu0  ;;  %v1463_v43 = vpop.f32.mrf.mxu1 }
 0x50f   : > { %v1486_v53 = vadd.f32 %v1443_v15, %v1423_v62  ;;  %v1506_v59 = vadd.f32 %v1463_v43, %v1424_v47 }
 0x511   : > { %v1983_v29 = vmul.f32 -1.442695, %v1486_v53  ;;  %v1984_v41 = vmul.f32 -1.442695, %v1506_v59 }
 0x513   : > { %2105 = vpow2.f32 %v1983_v29 }
 0x514   : > { %2107 = vpow2.f32 %v1984_v41 }
 0x515   : > { %v1483_v63 = vpop.f32.mrf.mxu2 }
 0x516   : > { %v1526_v25 = vadd.f32 %v3251_v7, %v1483_v63 }
 0x519   : > { %v2106_v49 = vpop.eup %2105 }
 0x51a   : > { %v2108_v57 = vpop.eup %2107  ;;  %v1490_v60 = vadd.f32 1.0, %v2106_v49 }
 0x51b   : > { %v1510_v17 = vadd.f32 1.0, %v2108_v57 }
 0x51c   : > { %2109 = vrcp.f32 %v1490_v60  ;;  %v1502_v55 = vand.u32 2147483648, %v1490_v60  ;;  %v1500_v44 = vand.u32 2147483647, %v1490_v60  ;;  %vm1496_vm1 = vweird.f32 %v1490_v60 }
 0x51d   : > { %2111 = vrcp.f32 %v1510_v17  ;;  %v1522_v35 = vand.u32 2147483648, %v1510_v17  ;;  %vm1516_vm5 = vweird.f32 %v1510_v17  ;;  %v1520_v33 = vand.u32 2147483647, %v1510_v17 }
 0x51e   : > { %v1503_v20 = vor.u32 1.1754944e-38, %v1502_v55  ;;  %vm1501_vm3 = vcmp.eq.f32.partialorder %v1500_v44, 8.507059e+37 }
 0x51f   : > { %v1523_v52 = vor.u32 1.1754944e-38, %v1522_v35  ;;  %vm1521_vm7 = vcmp.eq.f32.partialorder %v1520_v33, 8.507059e+37 }
 0x522   : > { %v2110_v42 = vpop.eup %2109 }
 0x523   : > { %v2112_v46 = vpop.eup %2111  ;;  %v1492_v48 = vmul.f32 %v2110_v42, %v1490_v60  ;;  %vm1497_vm0 = vweird.f32 %v2110_v42 }
 0x524   : > { %v1512_v58 = vmul.f32 %v2112_v46, %v1510_v17  ;;  %vm1498_vm2 = vmor %vm1496_vm1, %vm1497_vm0  ;;  %vm1517_vm4 = vweird.f32 %v2112_v46  ;;  %v1546_v17 = vld [vmem:[%s3274_s1 + $0x10] sm:$0xff] }
 0x525   : > { %v1493_v9 = vsub.f32 1.0, %v1492_v48  ;;  %vm1518_vm6 = vmor %vm1516_vm5, %vm1517_vm4 }
 0x526   : > { %v1513_v32 = vsub.f32 1.0, %v1512_v58 }
 0x527   : > { %v1494_v54 = vmul.f32 %v2110_v42, %v1493_v9 }
 0x528   : > { %v1514_v6 = vmul.f32 %v2112_v46, %v1513_v32 }
 0x529   : > { %v1495_v4 = vadd.f32 %v2110_v42, %v1494_v54 }
 0x52a   : > { %v1515_v28 = vadd.f32 %v2112_v46, %v1514_v6 }
 0x52b   : > { %v1499_v23 = vsel %vm1498_vm2, %v2110_v42, %v1495_v4 }
 0x52c   : > { %v1504_v31 = vsel %vm1501_vm3, %v1503_v20, %v1499_v23  ;;  %v1519_v22 = vsel %vm1518_vm6, %v2112_v46, %v1515_v28 }
 0x52d   : > { %v1527_v38 = vmul.f32 %v1526_v25, %v1504_v31  ;;  %v1524_v50 = vsel %vm1521_vm7, %v1523_v52, %v1519_v22 }
 0x52e   : > { %v1530_v18 = vsub.f32 1.0, %v1524_v50  ;;  %v1532_v40 = vmul.f32 %v1524_v50, %v1412_v37 }
 0x52f   : > { %v1528_v8 = vadd.f32 %v1527_v38, %v1425_v45 }
 0x531   : > { %2113 = vtanh.f32 %v1528_v8 }
 0x537   : > { %v2114_v56 = vpop.eup %2113 }
 0x538   : > { %v1531_v39 = vmul.f32 %v2114_v56, %v1530_v18 }
 0x53a   : > { %v1533_v51 = vadd.f32 %v1532_v40, %v1531_v39 }
 0x53c   : > { %1535 = vst [vmem:[%s1534_s8] sm:$0xff] %v1533_v51  ;;  %1563 = vmatmul.f32.vlgmr.msra.gmra.mxu3 %v1533_v51  ;;  %1583 = vmatmul.f32.vlgmr.msra.gmra.mxu0 %v1533_v51 }
 0x53d   : > { %1603 = vmatmul.f32.vlgmr.msra.gmra.mxu1 %v1533_v51 }
 0x5b9   : > { %v1584_v2 = vpop.f32.mrf.mxu0 }
 0x5ba   : > { %v1627_v3 = vadd.f32 %v1584_v2, %v1545_v0  ;;  %v1604_v15 = vpop.f32.mrf.mxu1 }
 0x5bb   : > { %v1647_v53 = vadd.f32 %v3251_v7, %v1604_v15 }
 0x5bc   : > { %v1988_v5 = vmul.f32 -1.442695, %v1627_v3 }
 0x5be   : > { %2115 = vpow2.f32 %v1988_v5 }
 0x5bf   : > { %v1564_v11 = vpop.f32.mrf.mxu3 }
 0x5c0   : > { %v1607_v12 = vadd.f32 %v1564_v11, %v1544_v10 }
 0x5c2   : > { %v1987_v13 = vmul.f32 -1.442695, %v1607_v12 }
 0x5c4   : > { %v2116_v14 = vpop.eup %2115  ;;  %2117 = vpow2.f32 %v1987_v13 }
 0x5c5   : > { %v1631_v16 = vadd.f32 1.0, %v2116_v14 }
 0x5c7   : > { %2119 = vrcp.f32 %v1631_v16  ;;  %v1643_v49 = vand.u32 2147483648, %v1631_v16  ;;  %vm1637_vm13 = vweird.f32 %v1631_v16  ;;  %v1641_v60 = vand.u32 2147483647, %v1631_v16 }
 0x5c9   : > { %v1644_v48 = vor.u32 1.1754944e-38, %v1643_v49  ;;  %vm1642_vm15 = vcmp.eq.f32.partialorder %v1641_v60, 8.507059e+37 }
 0x5ca   : > { %v2118_v61 = vpop.eup %2117 }
 0x5cb   : > { %v1611_v1 = vadd.f32 1.0, %v2118_v61 }
 0x5cd   : > { %2121 = vrcp.f32 %v1611_v1  ;;  %v2120_v19 = vpop.eup %2119  ;;  %v1623_v36 = vand.u32 2147483648, %v1611_v1  ;;  %v1621_v37 = vand.u32 2147483647, %v1611_v1  ;;  %vm1617_vm9 = vweird.f32 %v1611_v1 }
 0x5ce   : > { %v1633_v21 = vmul.f32 %v2120_v19, %v1631_v16  ;;  %vm1638_vm12 = vweird.f32 %v2120_v19 }
 0x5cf   : > { %v1624_v43 = vor.u32 1.1754944e-38, %v1623_v36  ;;  %vm1622_vm11 = vcmp.eq.f32.partialorder %v1621_v37, 8.507059e+37  ;;  %vm1639_vm14 = vmor %vm1637_vm13, %vm1638_vm12 }
 0x5d0   : > { %v1634_v30 = vsub.f32 1.0, %v1633_v21 }
 0x5d2   : > { %v1635_v62 = vmul.f32 %v2120_v19, %v1634_v30 }
 0x5d3   : > { %v2122_v24 = vpop.eup %2121 }
 0x5d4   : > { %v1613_v26 = vmul.f32 %v2122_v24, %v1611_v1  ;;  %vm1618_vm8 = vweird.f32 %v2122_v24  ;;  %v1636_v29 = vadd.f32 %v2120_v19, %v1635_v62 }
 0x5d5   : > { %vm1619_vm10 = vmor %vm1617_vm9, %vm1618_vm8 }
 0x5d6   : > { %v1614_v34 = vsub.f32 1.0, %v1613_v26  ;;  %v1640_v46 = vsel %vm1639_vm14, %v2120_v19, %v1636_v29 }
 0x5d7   : > { %v1645_v7 = vsel %vm1642_vm15, %v1644_v48, %v1640_v46 }
 0x5d8   : > { %v1615_v27 = vmul.f32 %v2122_v24, %v1614_v34  ;;  %v1651_v58 = vsub.f32 1.0, %v1645_v7  ;;  %v1653_v32 = vmul.f32 %v1645_v7, %v1533_v51 }
 0x5da   : > { %v1616_v47 = vadd.f32 %v2122_v24, %v1615_v27 }
 0x5dc   : > { %v1620_v59 = vsel %vm1619_vm10, %v2122_v24, %v1616_v47 }
 0x5dd   : > { %v1625_v41 = vsel %vm1622_vm11, %v1624_v43, %v1620_v59 }
 0x5de   : > { %v1648_v57 = vmul.f32 %v1647_v53, %v1625_v41 }
 0x5e0   : > { %v1649_v42 = vadd.f32 %v1648_v57, %v1546_v17 }
 0x5e2   : > { %2123 = vtanh.f32 %v1649_v42 }
 0x5e8   : > { %v2124_v9 = vpop.eup %2123 }
 0x5e9   : > { %v1652_v55 = vmul.f32 %v2124_v9, %v1651_v58 }
 0x5ea   : > { %1672 = sbr.rel (!%p2286_p3) target bundleno = 1533 (0x5fd), region = 56 }
 0x5eb   : > { %v1654_v54 = vadd.f32 %v1653_v32, %v1652_v55 }
 0x5ed   : > { %1656 = vst [vmem:[%s1655_s14] sm:$0xff] %v1654_v54 }
 0x5ee   : > { %1661 = vst [vmem:[%s418_s29] sm:$0xff] %v1654_v54 }
 0x5f4   : > { %v1723_v44 = vld [vmem:[%s2803_s10] sm:$0xff]  ;;  %v1725_v6 = vld [vmem:[%s2803_s10 + $0x8] sm:$0xff]  ;;  %v1727_v63 = vld [vmem:[%s2803_s10 + $0x10] sm:$0xff] }
 0x5f5   : > { %1724 = vst [vmem:[%s1680_s17] sm:$0xff] %v1723_v44  ;;  %v1729_v4 = vld [vmem:[%s2803_s10 + $0x18] sm:$0xff]  ;;  %v1731_v20 = vld [vmem:[%s2803_s10 + $0x20] sm:$0xff]  ;;  %v1733_v23 = vld [vmem:[%s2803_s10 + $0x28] sm:$0xff] }
 0x5f6   : > { %1726 = vst [vmem:[%s1680_s17 + $0x10] sm:$0xff] %v1725_v6  ;;  %v1735_v25 = vld [vmem:[%s2803_s10 + $0x30] sm:$0xff]  ;;  %v1737_v28 = vld [vmem:[%s2803_s10 + $0x38] sm:$0xff] }
 0x5f7   : > { %1728 = vst [vmem:[%s1680_s17 + $0x20] sm:$0xff] %v1727_v63 }
 0x5f8   : > { %1730 = vst [vmem:[%s1680_s17 + $0x30] sm:$0xff] %v1729_v4 }
 0x5f9   : > { %1732 = vst [vmem:[%s1680_s17 + $0x40] sm:$0xff] %v1731_v20 }
 0x5fa   : > { %1734 = vst [vmem:[%s1680_s17 + $0x50] sm:$0xff] %v1733_v23 }
 0x5fb   : > { %1736 = vst [vmem:[%s1680_s17 + $0x60] sm:$0xff] %v1735_v25 }
 0x5fc   : > { %1738 = vst [vmem:[%s1680_s17 + $0x70] sm:$0xff] %v1737_v28 }
 0x5fd PF: > { %s18_s28 = sadd.s32 1, %s2212_s28   ;;  %s3376_s24 = smov %s2200_s25 }
 0x5fe   : > { %p15_p9 = scmp.ge.s32.totalorder %s18_s28, 4   ;;  %s3377_s25 = smov %s2295_s11 }
 0x5ff   : > { %s3378_s26 = smov %s2208_s27  ;;  %s3379_s27 = smov %s3381_s30 }
 0x600   :  { %17 = sbr.rel (!%p15_p9) target bundleno = 6 (0x6), region = 163 }

</bundles_post_ra>
